<compile_context>
chip_gen: v5e
topology: v5e:2x2
jax: 0.10.0
libtpu: 0.0.40
codegen_flags: <defaults>
</compile_context>

<pallas_src>
import functools

import numpy as np
import jax
import jax.numpy as jnp
from jax import lax
from jax.experimental import pallas as pl
from jax.experimental.pallas import tpu as pltpu

REF_PREC = lax.Precision.HIGHEST   # reference path only
BN_EPS = 1e-3                      # nn.BatchNorm2d(..., eps=0.001) in the module


# --------------------------------------------------------------------------
# Fused Pallas kernel (HEU + REU/ConvGRU in one grid step per image).
# In-kernel activation layout: (H, W*C) -- rows on sublanes, (pixel, channel)
# packed along lanes (lane-dense: W*C = 128 at the test shape).
# --------------------------------------------------------------------------

def _reheb_kernel(*refs, H, WC, has_hx):
    if has_hx:
        (x_ref, hx_ref,
         res_band, res_shift, last_band, last_shift, heu_pw1, heu_w2r,
         xg_band, xg_bias, hg_band, hg_bias, hn_band, hn_bias,
         reu_pw1, reu_w2r, out_ref) = refs
    else:
        (x_ref,
         res_band, res_shift, last_band, last_shift, heu_pw1, heu_w2r,
         xg_band, xg_bias, reu_pw1, reu_w2r, out_ref) = refs

    # Row masks for the vertical halo (hoisted once; JAX does not CSE broadcasts).
    row = lax.broadcasted_iota(jnp.int32, (H, WC), 0)
    not_top = row > 0
    not_bot = row < H - 1

    def stack3(a):
        """(H, WC) f32 -> (H, 3*WC) bf16 = [x[h-1] | x[h] | x[h+1]], zero halo rows.

        The +-1-row shifts use pltpu.roll (XLU slot, np.roll semantics) plus the
        precomputed row masks; horizontal taps/padding live in the banded weights.
        """
        up = jnp.where(not_top, pltpu.roll(a, 1, 0), 0.0)        # x[h-1]
        dn = jnp.where(not_bot, pltpu.roll(a, H - 1, 0), 0.0)    # x[h+1]
        return jnp.concatenate([up, a, dn], axis=1).astype(jnp.bfloat16)

    def bdot(s_bf16, band_bf16):
        # One MXU dot per 3x3 conv: (H, 3*WC) @ (3*WC, W*Cout), f32 accumulation.
        return jnp.dot(s_bf16, band_bf16, preferred_element_type=jnp.float32)

    def se_gate(y, pw1_ref, w2r_ref):
        """SELayer gate: rowsum -> (pool@W1 folded) -> ReLU -> W2 (lane-replicated)
        -> sigmoid.  Only 2 small dots; result is a (1, WC) broadcastable gate."""
        mid = jnp.maximum(
            jnp.dot(jnp.sum(y, axis=0, keepdims=True), pw1_ref[...],
                    preferred_element_type=jnp.float32), 0.0)            # (1, C//4)
        return jax.nn.sigmoid(
            jnp.dot(mid, w2r_ref[...], preferred_element_type=jnp.float32))  # (1, WC)

    x = x_ref[0]                                          # (H, WC) f32

    # ---- HEU -------------------------------------------------------------
    sx = stack3(x)
    t = jnp.maximum(bdot(sx, res_band[0]) + res_shift[0], 0.0)      # conv+BN+ReLU
    t = jnp.maximum(bdot(stack3(t), res_band[1]) + res_shift[1], 0.0)
    out1 = x + t                                          # ResidualBlock 0
    s1 = stack3(out1)
    t = jnp.maximum(bdot(s1, res_band[2]) + res_shift[2], 0.0)
    t = jnp.maximum(bdot(stack3(t), res_band[3]) + res_shift[3], 0.0)
    out2 = out1 + t                                       # ResidualBlock 1

    # last conv on cat([x, out1, out2]): weight split along Cin, no concat;
    # sx / s1 stacks are reused.
    y = (bdot(sx, last_band[0]) + bdot(s1, last_band[1])
         + bdot(stack3(out2), last_band[2]) + last_shift[...])
    heu = jnp.maximum(y * se_gate(y, heu_pw1, heu_w2r), 0.0) + x     # SE->ReLU->+x

    # ---- REU / ConvGRU ----------------------------------------------------
    sg = stack3(heu)
    xg = bdot(sg, xg_band[...]) + xg_bias[...]            # stacked gate conv on x
    if has_hx:
        hprev = hx_ref[0]
        xz, xr, xn = xg[:, 0:WC], xg[:, WC:2 * WC], xg[:, 2 * WC:3 * WC]
        hg = bdot(stack3(hprev), hg_band[...]) + hg_bias[...]        # [hz | hr]
        z = jax.nn.sigmoid(xz + hg[:, 0:WC])
        r = jax.nn.sigmoid(xr + hg[:, WC:2 * WC])
        n = jnp.tanh(xn + bdot(stack3(r * hprev), hn_band[...]) + hn_bias[...])
        h = (1.0 - z) * hprev + z * n
    else:
        xz, xn = xg[:, 0:WC], xg[:, WC:2 * WC]            # 2-gate band: no xr work
        h = jax.nn.sigmoid(xz) * jnp.tanh(xn)
    h = jnp.where(h >= 0.0, h, 0.2 * h)                   # LeakyReLU(0.2) on state

    o = h * se_gate(h, reu_pw1, reu_w2r)
    out_ref[0] = jnp.where(o >= 0.0, o, 0.2 * o)          # SE -> LeakyReLU(0.2)


# --------------------------------------------------------------------------
# Pallas wrapper
# --------------------------------------------------------------------------

def _img_spec(H, WC):
    return pl.BlockSpec((1, H, WC), lambda b: (b, 0, 0))


def _full_spec(a):
    # Constant-per-grid weights: block index never changes, so Pallas will not
    # re-DMA across grid steps.  TODO(synk): pipeline_mode=pl.Buffered(1) to drop
    # the redundant second buffer once this is generalised to larger shapes.
    nd = a.ndim
    return pl.BlockSpec(a.shape, lambda b, _nd=nd: (0,) * _nd)


def reheb_forward(x_nhwc, hp, rp, hx_nhwc=None):
    """ReHEB forward.  x/hx: (B, H, W, C) NHWC.  Returns (out, mem) like the module."""
    B, H, W, C = x_nhwc.shape
    WC = W * C
    x2 = x_nhwc.reshape(B, H, WC)                         # free row-major reshape
    has_hx = hx_nhwc is not None
    if has_hx:
        data = (x2, hx_nhwc.reshape(B, H, WC))
        weights = (hp['res_band'], hp['res_shift'], hp['last_band'], hp['last_shift'],
                   hp['pw1'], hp['w2rep'],
                   rp['xg3_band'], rp['xg3_bias'], rp['hg_band'], rp['hg_bias'],
                   rp['hn_band'], rp['hn_bias'], rp['pw1'], rp['w2rep'])
    else:
        data = (x2,)
        weights = (hp['res_band'], hp['res_shift'], hp['last_band'], hp['last_shift'],
                   hp['pw1'], hp['w2rep'],
                   rp['xg2_band'], rp['xg2_bias'], rp['pw1'], rp['w2rep'])

    out2 = pl.pallas_call(
        functools.partial(_reheb_kernel, H=H, WC=WC, has_hx=has_hx),
        grid=(B,),
        out_shape=jax.ShapeDtypeStruct((B, H, WC), jnp.float32),
        in_specs=[_img_spec(H, WC) for _ in data] + [_full_spec(w) for w in weights],
        out_specs=_img_spec(H, WC),
        compiler_params=pltpu.CompilerParams(dimension_semantics=("parallel",)),
    )(*data, *weights)

    out = out2.reshape(B, H, W, C)
    return out, out


# --------------------------------------------------------------------------
# Raw parameters (deterministic, PyTorch module shapes)
# --------------------------------------------------------------------------

def init_conv(key, cin, cout, k=3):
    kw, kb = jax.random.split(key)
    bound = 1.0 / np.sqrt(cin * k * k)
    w = jax.random.uniform(kw, (cout, cin, k, k), jnp.float32, -bound, bound)  # OIHW
    b = jax.random.uniform(kb, (cout,), jnp.float32, -bound, bound)
    return w, b


def init_bn(key, c):
    k1, k2, k3, k4 = jax.random.split(key, 4)
    gamma = jax.random.uniform(k1, (c,), jnp.float32, 0.5, 1.5)
    beta = 0.1 * jax.random.normal(k2, (c,), jnp.float32)
    mean = 0.1 * jax.random.normal(k3, (c,), jnp.float32)
    var = jax.random.uniform(k4, (c,), jnp.float32, 0.5, 1.5)
    return gamma, beta, mean, var


def make_params(key, planes):
    keys = jax.random.split(key, 32)
    it = iter(keys)
    nk = lambda: next(it)
    r = planes // 4
    p = {}
    for blk in ('res0', 'res1'):
        p[f'{blk}_conv1'] = init_conv(nk(), planes, planes)
        p[f'{blk}_bn1'] = init_bn(nk(), planes)
        p[f'{blk}_conv2'] = init_conv(nk(), planes, planes)
        p[f'{blk}_bn2'] = init_bn(nk(), planes)
    p['last_conv'] = init_conv(nk(), planes * 3, planes)
    p['last_bn'] = init_bn(nk(), planes)
    p['heu_se_w1'] = jax.random.uniform(nk(), (r, planes), jnp.float32,
                                        -1 / np.sqrt(planes), 1 / np.sqrt(planes))
    p['heu_se_w2'] = jax.random.uniform(nk(), (planes, r), jnp.float32,
                                        -1 / np.sqrt(r), 1 / np.sqrt(r))
    for name in ('xz', 'xr', 'xn', 'hz', 'hr', 'hn'):
        p[f'gru_{name}'] = init_conv(nk(), planes, planes)
    p['reu_se_w1'] = jax.random.uniform(nk(), (r, planes), jnp.float32,
                                        -1 / np.sqrt(planes), 1 / np.sqrt(planes))
    p['reu_se_w2'] = jax.random.uniform(nk(), (planes, r), jnp.float32,
                                        -1 / np.sqrt(r), 1 / np.sqrt(r))
    return p


# --------------------------------------------------------------------------
# One-time host-side weight preparation (tap-stacked banded weights, folded BN,
# folded SE pool / replicated SE FC2, bf16 casts)
# --------------------------------------------------------------------------

def _conv_band_stacked(w_oihw, W, scale=None):
    """OIHW (Cout, Cin, 3, 3) conv weight -> tap-stacked band (3*W*Cin, W*Cout).

    In the (H, W*C) activation layout, a 3x3 'SAME' conv is
        out[h, :] = [x[h-1,:] | x[h,:] | x[h+1,:]] @ band
    with horizontal taps / horizontal zero-padding folded into the band and an
    optional per-output-channel scale (folded BatchNorm) multiplied in.
    """
    w = np.asarray(w_oihw, np.float32)
    co, ci = w.shape[0], w.shape[1]
    if scale is not None:
        w = w * np.asarray(scale, np.float32)[:, None, None, None]
    band = np.zeros((3, W * ci, W * co), np.float32)
    for kh in range(3):
        for kw in range(3):
            blk = w[:, :, kh, kw].T                        # (Cin, Cout)
            for wo in range(W):
                wi = wo + (kw - 1)
                if 0 <= wi < W:
                    band[kh, wi * ci:(wi + 1) * ci, wo * co:(wo + 1) * co] = blk
    return band.reshape(3 * W * ci, W * co)                # taps kh=0,1,2 along K


def _fold_bn(bias, bn, eps=BN_EPS):
    gamma, beta, mean, var = [np.asarray(t, np.float32) for t in bn]
    scale = gamma / np.sqrt(var + eps)
    shift = beta + (np.asarray(bias, np.float32) - mean) * scale
    return scale, shift


def prepare_reheb_params(p, H, W, C):
    WC = W * C
    pool = np.tile(np.eye(C, dtype=np.float32), (W, 1)) / float(H * W)   # (WC, C)

    def se_fold(w1, w2):
        w1 = np.asarray(w1, np.float32)                    # (C//4, C)
        w2 = np.asarray(w2, np.float32)                    # (C, C//4)
        pw1 = pool @ w1.T                                  # (WC, C//4): GAP folded in
        w2rep = np.tile(w2.T, (1, W))                      # (C//4, WC): lane-replicated
        return jnp.asarray(pw1), jnp.asarray(w2rep)

    # HEU --------------------------------------------------------------------
    res_band, res_shift = [], []
    for blk in ('res0', 'res1'):
        for j in (1, 2):
            w, b = p[f'{blk}_conv{j}']
            s, sh = _fold_bn(b, p[f'{blk}_bn{j}'])
            res_band.append(_conv_band_stacked(w, W, scale=s))
            res_shift.append(np.tile(sh, W)[None, :])

    wl, bl = p['last_conv']
    sl, shl = _fold_bn(bl, p['last_bn'])
    wl = np.asarray(wl, np.float32)
    last_band = np.stack(
        [_conv_band_stacked(wl[:, i * C:(i + 1) * C], W, scale=sl) for i in range(3)])

    heu_pw1, heu_w2rep = se_fold(p['heu_se_w1'], p['heu_se_w2'])
    hp = dict(
        res_band=jnp.asarray(np.stack(res_band), jnp.bfloat16),   # (4, 3*WC, WC)
        res_shift=jnp.asarray(np.stack(res_shift)),               # (4, 1, WC) f32
        last_band=jnp.asarray(last_band, jnp.bfloat16),           # (3, 3*WC, WC)
        last_shift=jnp.asarray(np.tile(shl, W)[None, :]),         # (1, WC) f32
        pw1=heu_pw1, w2rep=heu_w2rep,
    )

    # REU / ConvGRU ------------------------------------------------------------
    def gband(name):
        w, b = p[f'gru_{name}']
        return _conv_band_stacked(w, W), np.tile(np.asarray(b, np.float32), W)

    b_xz, bias_xz = gband('xz')
    b_xr, bias_xr = gband('xr')
    b_xn, bias_xn = gband('xn')
    b_hz, bias_hz = gband('hz')
    b_hr, bias_hr = gband('hr')
    b_hn, bias_hn = gband('hn')

    reu_pw1, reu_w2rep = se_fold(p['reu_se_w1'], p['reu_se_w2'])
    rp = dict(
        # hx path: 3-gate stacked x band [xz | xr | xn]
        xg3_band=jnp.asarray(np.concatenate([b_xz, b_xr, b_xn], axis=1), jnp.bfloat16),
        xg3_bias=jnp.asarray(np.concatenate([bias_xz, bias_xr, bias_xn])[None, :]),
        # hx=None path: 2-gate stacked x band [xz | xn] (xr never computed)
        xg2_band=jnp.asarray(np.concatenate([b_xz, b_xn], axis=1), jnp.bfloat16),
        xg2_bias=jnp.asarray(np.concatenate([bias_xz, bias_xn])[None, :]),
        hg_band=jnp.asarray(np.concatenate([b_hz, b_hr], axis=1), jnp.bfloat16),
        hg_bias=jnp.asarray(np.concatenate([bias_hz, bias_hr])[None, :]),
        hn_band=jnp.asarray(b_hn, jnp.bfloat16),
        hn_bias=jnp.asarray(bias_hn[None, :]),
        pw1=reu_pw1, w2rep=reu_w2rep,
    )
    return hp, rp


# --------------------------------------------------------------------------
# Pure-JAX reference (for in-script validation)
# --------------------------------------------------------------------------

def conv3x3_ref(x, w_oihw, b):
    w = jnp.transpose(w_oihw, (2, 3, 1, 0))  # HWIO
    y = lax.conv_general_dilated(x, w, (1, 1), 'SAME',
                                 dimension_numbers=('NHWC', 'HWIO', 'NHWC'),
                                 precision=REF_PREC)
    return y + b.reshape(1, 1, 1, -1)


def bn_ref(x, bn, eps=BN_EPS):
    gamma, beta, mean, var = bn
    return (x - mean) / jnp.sqrt(var + eps) * gamma + beta


def se_ref(x, w1, w2):
    pooled = jnp.mean(x, axis=(1, 2))
    h = jnp.maximum(jnp.dot(pooled, w1.T, precision=REF_PREC), 0.0)
    s = jax.nn.sigmoid(jnp.dot(h, w2.T, precision=REF_PREC))
    return x * s[:, None, None, :]


def leaky_ref(x):
    return jnp.where(x >= 0.0, x, 0.2 * x)


def residual_block_ref(x, p, prefix):
    w1, b1 = p[f'{prefix}_conv1']
    w2, b2 = p[f'{prefix}_conv2']
    t = jnp.maximum(bn_ref(conv3x3_ref(x, w1, b1), p[f'{prefix}_bn1']), 0.0)
    t = jnp.maximum(bn_ref(conv3x3_ref(t, w2, b2), p[f'{prefix}_bn2']), 0.0)
    return x + t


def heu_ref(x, p):
    out1 = residual_block_ref(x, p, 'res0')
    out2 = residual_block_ref(out1, p, 'res1')
    cat = jnp.concatenate([x, out1, out2], axis=-1)
    wl, bl = p['last_conv']
    t = bn_ref(conv3x3_ref(cat, wl, bl), p['last_bn'])
    t = jnp.maximum(se_ref(t, p['heu_se_w1'], p['heu_se_w2']), 0.0)
    return t + x


def reu_ref(x, p, hx=None):
    gc = lambda name, inp: conv3x3_ref(inp, *p[f'gru_{name}'])
    if hx is None:
        h = jax.nn.sigmoid(gc('xz', x)) * jnp.tanh(gc('xn', x))
    else:
        z = jax.nn.sigmoid(gc('xz', x) + gc('hz', hx))
        r = jax.nn.sigmoid(gc('xr', x) + gc('hr', hx))
        n = jnp.tanh(gc('xn', x) + gc('hn', r * hx))
        h = (1.0 - z) * hx + z * n
    h = leaky_ref(h)
    out = leaky_ref(se_ref(h, p['reu_se_w1'], p['reu_se_w2']))
    return out, out


def reheb_ref(x, p, hx=None):
    return reu_ref(heu_ref(x, p), p, hx)


# --------------------------------------------------------------------------

if __name__ == "__main__":
    key = jax.random.PRNGKey(0)
    kx, khx, kp = jax.random.split(key, 3)

    B, C, H, W = 2, 8, 16, 16          # planes=8 -> W*C = 128 (one full lane tile)
    x_nchw = jax.random.normal(kx, (B, C, H, W), jnp.float32)
    hx_nchw = jax.random.normal(khx, (B, C, H, W), jnp.float32)
    params = make_params(kp, C)
    hp, rp = prepare_reheb_params(params, H, W, C)   # one-time weight preparation

    # NCHW -> NHWC at the wrapper boundary
    x = jnp.transpose(x_nchw, (0, 2, 3, 1))
    hx = jnp.transpose(hx_nchw, (0, 2, 3, 1))

    # hx=None path (module default) and hx-provided path
    out0, mem0 = reheb_forward(x, hp, rp, hx_nhwc=None)
    out0 = jax.block_until_ready(out0)
    out1, mem1 = reheb_forward(x, hp, rp, hx_nhwc=hx)
    out1 = jax.block_until_ready(out1)

    ref0, _ = reheb_ref(x, params, hx=None)
    ref1, _ = reheb_ref(x, params, hx=hx)

    # Tolerance: bf16 multiplies with f32 accumulation (same regime as the TPU
    # default-precision f32 dots that validated at 3e-2 previously).  Per-conv RMS
    # error ~ u*sqrt(K)*|w||x| ~ 2-4e-3 (u = 2^-8), ~9 chained convs + GRU -> ~1e-2
    # RMS, max over B*H*W*C = 4096 outputs ~ 3-4x RMS -> 4e-2 budget.
    np.testing.assert_allclose(np.asarray(out0), np.asarray(ref0), atol=4e-2, rtol=4e-2)
    np.testing.assert_allclose(np.asarray(out1), np.asarray(ref1), atol=4e-2, rtol=4e-2)

    print("KERNEL_OK")
</pallas_src>

<mosaic_0001>
module attributes {stable_mosaic.version = 11 : i64} {
  func.func @_reheb_kernel(%arg0: i32, %arg1: memref<1x16x128xf32, #tpu.memory_space<vmem>>, %arg2: memref<4x384x128xbf16, #tpu.memory_space<vmem>>, %arg3: memref<4x1x128xf32, #tpu.memory_space<vmem>>, %arg4: memref<3x384x128xbf16, #tpu.memory_space<vmem>>, %arg5: memref<1x128xf32, #tpu.memory_space<vmem>>, %arg6: memref<128x2xf32, #tpu.memory_space<vmem>>, %arg7: memref<2x128xf32, #tpu.memory_space<vmem>>, %arg8: memref<384x256xbf16, #tpu.memory_space<vmem>>, %arg9: memref<1x256xf32, #tpu.memory_space<vmem>>, %arg10: memref<128x2xf32, #tpu.memory_space<vmem>>, %arg11: memref<2x128xf32, #tpu.memory_space<vmem>>, %arg12: memref<1x16x128xf32, #tpu.memory_space<vmem>>) attributes {dimension_semantics = [#tpu.dimension_semantics<parallel>], iteration_bounds = array<i64: 2>, scalar_prefetch = 0 : i64, scratch_operands = 0 : i64, tpu.core_type = #tpu.core_type<tc>, window_params = [{transform_indices = @transform_0, window_bounds = array<i64: 1, 16, 128>}, {pipeline_mode = #tpu.pipeline_mode<synchronous>, transform_indices = @transform_1, window_bounds = array<i64: 4, 384, 128>}, {pipeline_mode = #tpu.pipeline_mode<synchronous>, transform_indices = @transform_2, window_bounds = array<i64: 4, 1, 128>}, {pipeline_mode = #tpu.pipeline_mode<synchronous>, transform_indices = @transform_3, window_bounds = array<i64: 3, 384, 128>}, {pipeline_mode = #tpu.pipeline_mode<synchronous>, transform_indices = @transform_4, window_bounds = array<i64: 1, 128>}, {pipeline_mode = #tpu.pipeline_mode<synchronous>, transform_indices = @transform_5, window_bounds = array<i64: 128, 2>}, {pipeline_mode = #tpu.pipeline_mode<synchronous>, transform_indices = @transform_6, window_bounds = array<i64: 2, 128>}, {pipeline_mode = #tpu.pipeline_mode<synchronous>, transform_indices = @transform_7, window_bounds = array<i64: 384, 256>}, {pipeline_mode = #tpu.pipeline_mode<synchronous>, transform_indices = @transform_8, window_bounds = array<i64: 1, 256>}, {pipeline_mode = #tpu.pipeline_mode<synchronous>, transform_indices = @transform_9, window_bounds = array<i64: 128, 2>}, {pipeline_mode = #tpu.pipeline_mode<synchronous>, transform_indices = @transform_10, window_bounds = array<i64: 2, 128>}, {transform_indices = @transform_11, window_bounds = array<i64: 1, 16, 128>}]} {
    %0 = tpu.iota {dimensions = array<i32: 0>} : vector<16x128xi32>
    %c0_i32 = arith.constant 0 : i32
    %1 = vector.broadcast %c0_i32 : i32 to vector<16x128xi32>
    %2 = arith.cmpi sgt, %0, %1 : vector<16x128xi32>
    %c15_i32 = arith.constant 15 : i32
    %3 = vector.broadcast %c15_i32 : i32 to vector<16x128xi32>
    %4 = arith.cmpi slt, %0, %3 : vector<16x128xi32>
    %c0 = arith.constant 0 : index
    %c0_0 = arith.constant 0 : index
    %c0_1 = arith.constant 0 : index
    %5 = vector.load %arg1[%c0, %c0_0, %c0_1] : memref<1x16x128xf32, #tpu.memory_space<vmem>>, vector<1x16x128xf32>
    %6 = vector.shape_cast %5 : vector<1x16x128xf32> to vector<16x128xf32>
    %c1_i32 = arith.constant 1 : i32
    %7 = tpu.dynamic_rotate %6 by %c1_i32 dim 0 : vector<16x128xf32>, i32 -> vector<16x128xf32>
    %cst = arith.constant 0.000000e+00 : f32
    %8 = vector.broadcast %cst : f32 to vector<16x128xf32>
    %9 = arith.select %2, %7, %8 : vector<16x128xi1>, vector<16x128xf32>
    %c15_i32_2 = arith.constant 15 : i32
    %10 = tpu.dynamic_rotate %6 by %c15_i32_2 dim 0 : vector<16x128xf32>, i32 -> vector<16x128xf32>
    %cst_3 = arith.constant 0.000000e+00 : f32
    %11 = vector.broadcast %cst_3 : f32 to vector<16x128xf32>
    %12 = arith.select %4, %10, %11 : vector<16x128xi1>, vector<16x128xf32>
    %13 = tpu.concatenate %9, %6, %12 in 1 : vector<16x128xf32>, vector<16x128xf32>, vector<16x128xf32> -> vector<16x384xf32>
    %14 = arith.truncf %13 : vector<16x384xf32> to vector<16x384xbf16>
    %c0_4 = arith.constant 0 : index
    %c0_5 = arith.constant 0 : index
    %c0_6 = arith.constant 0 : index
    %15 = vector.load %arg2[%c0_4, %c0_5, %c0_6] : memref<4x384x128xbf16, #tpu.memory_space<vmem>>, vector<1x384x128xbf16>
    %16 = vector.shape_cast %15 : vector<1x384x128xbf16> to vector<384x128xbf16>
    %cst_7 = arith.constant dense<0.000000e+00> : vector<16x128xf32>
    %17 = tpu.matmul %14, %16, %cst_7 {dimension_numbers = #tpu.dot_dimension_numbers<[1], [0], [0], [1], [0, 0, 1, 1], [], []>} : vector<16x384xbf16>, vector<384x128xbf16>, vector<16x128xf32> -> vector<16x128xf32>
    %c0_8 = arith.constant 0 : index
    %c0_9 = arith.constant 0 : index
    %c0_10 = arith.constant 0 : index
    %18 = vector.load %arg3[%c0_8, %c0_9, %c0_10] : memref<4x1x128xf32, #tpu.memory_space<vmem>>, vector<1x1x128xf32>
    %19 = vector.shape_cast %18 : vector<1x1x128xf32> to vector<1x128xf32>
    %20 = vector.broadcast %19 : vector<1x128xf32> to vector<16x128xf32>
    %21 = arith.addf %17, %20 : vector<16x128xf32>
    %cst_11 = arith.constant 0.000000e+00 : f32
    %22 = vector.broadcast %cst_11 : f32 to vector<16x128xf32>
    %23 = arith.maximumf %21, %22 : vector<16x128xf32>
    %c1_i32_12 = arith.constant 1 : i32
    %24 = tpu.dynamic_rotate %23 by %c1_i32_12 dim 0 : vector<16x128xf32>, i32 -> vector<16x128xf32>
    %cst_13 = arith.constant 0.000000e+00 : f32
    %25 = vector.broadcast %cst_13 : f32 to vector<16x128xf32>
    %26 = arith.select %2, %24, %25 : vector<16x128xi1>, vector<16x128xf32>
    %c15_i32_14 = arith.constant 15 : i32
    %27 = tpu.dynamic_rotate %23 by %c15_i32_14 dim 0 : vector<16x128xf32>, i32 -> vector<16x128xf32>
    %cst_15 = arith.constant 0.000000e+00 : f32
    %28 = vector.broadcast %cst_15 : f32 to vector<16x128xf32>
    %29 = arith.select %4, %27, %28 : vector<16x128xi1>, vector<16x128xf32>
    %30 = tpu.concatenate %26, %23, %29 in 1 : vector<16x128xf32>, vector<16x128xf32>, vector<16x128xf32> -> vector<16x384xf32>
    %31 = arith.truncf %30 : vector<16x384xf32> to vector<16x384xbf16>
    %c1 = arith.constant 1 : index
    %c0_16 = arith.constant 0 : index
    %c0_17 = arith.constant 0 : index
    %32 = vector.load %arg2[%c1, %c0_16, %c0_17] : memref<4x384x128xbf16, #tpu.memory_space<vmem>>, vector<1x384x128xbf16>
    %33 = vector.shape_cast %32 : vector<1x384x128xbf16> to vector<384x128xbf16>
    %cst_18 = arith.constant dense<0.000000e+00> : vector<16x128xf32>
    %34 = tpu.matmul %31, %33, %cst_18 {dimension_numbers = #tpu.dot_dimension_numbers<[1], [0], [0], [1], [0, 0, 1, 1], [], []>} : vector<16x384xbf16>, vector<384x128xbf16>, vector<16x128xf32> -> vector<16x128xf32>
    %c1_19 = arith.constant 1 : index
    %c0_20 = arith.constant 0 : index
    %c0_21 = arith.constant 0 : index
    %35 = vector.load %arg3[%c1_19, %c0_20, %c0_21] : memref<4x1x128xf32, #tpu.memory_space<vmem>>, vector<1x1x128xf32>
    %36 = vector.shape_cast %35 : vector<1x1x128xf32> to vector<1x128xf32>
    %37 = vector.broadcast %36 : vector<1x128xf32> to vector<16x128xf32>
    %38 = arith.addf %34, %37 : vector<16x128xf32>
    %cst_22 = arith.constant 0.000000e+00 : f32
    %39 = vector.broadcast %cst_22 : f32 to vector<16x128xf32>
    %40 = arith.maximumf %38, %39 : vector<16x128xf32>
    %41 = arith.addf %6, %40 : vector<16x128xf32>
    %c1_i32_23 = arith.constant 1 : i32
    %42 = tpu.dynamic_rotate %41 by %c1_i32_23 dim 0 : vector<16x128xf32>, i32 -> vector<16x128xf32>
    %cst_24 = arith.constant 0.000000e+00 : f32
    %43 = vector.broadcast %cst_24 : f32 to vector<16x128xf32>
    %44 = arith.select %2, %42, %43 : vector<16x128xi1>, vector<16x128xf32>
    %c15_i32_25 = arith.constant 15 : i32
    %45 = tpu.dynamic_rotate %41 by %c15_i32_25 dim 0 : vector<16x128xf32>, i32 -> vector<16x128xf32>
    %cst_26 = arith.constant 0.000000e+00 : f32
    %46 = vector.broadcast %cst_26 : f32 to vector<16x128xf32>
    %47 = arith.select %4, %45, %46 : vector<16x128xi1>, vector<16x128xf32>
    %48 = tpu.concatenate %44, %41, %47 in 1 : vector<16x128xf32>, vector<16x128xf32>, vector<16x128xf32> -> vector<16x384xf32>
    %49 = arith.truncf %48 : vector<16x384xf32> to vector<16x384xbf16>
    %c2 = arith.constant 2 : index
    %c0_27 = arith.constant 0 : index
    %c0_28 = arith.constant 0 : index
    %50 = vector.load %arg2[%c2, %c0_27, %c0_28] : memref<4x384x128xbf16, #tpu.memory_space<vmem>>, vector<1x384x128xbf16>
    %51 = vector.shape_cast %50 : vector<1x384x128xbf16> to vector<384x128xbf16>
    %cst_29 = arith.constant dense<0.000000e+00> : vector<16x128xf32>
    %52 = tpu.matmul %49, %51, %cst_29 {dimension_numbers = #tpu.dot_dimension_numbers<[1], [0], [0], [1], [0, 0, 1, 1], [], []>} : vector<16x384xbf16>, vector<384x128xbf16>, vector<16x128xf32> -> vector<16x128xf32>
    %c2_30 = arith.constant 2 : index
    %c0_31 = arith.constant 0 : index
    %c0_32 = arith.constant 0 : index
    %53 = vector.load %arg3[%c2_30, %c0_31, %c0_32] : memref<4x1x128xf32, #tpu.memory_space<vmem>>, vector<1x1x128xf32>
    %54 = vector.shape_cast %53 : vector<1x1x128xf32> to vector<1x128xf32>
    %55 = vector.broadcast %54 : vector<1x128xf32> to vector<16x128xf32>
    %56 = arith.addf %52, %55 : vector<16x128xf32>
    %cst_33 = arith.constant 0.000000e+00 : f32
    %57 = vector.broadcast %cst_33 : f32 to vector<16x128xf32>
    %58 = arith.maximumf %56, %57 : vector<16x128xf32>
    %c1_i32_34 = arith.constant 1 : i32
    %59 = tpu.dynamic_rotate %58 by %c1_i32_34 dim 0 : vector<16x128xf32>, i32 -> vector<16x128xf32>
    %cst_35 = arith.constant 0.000000e+00 : f32
    %60 = vector.broadcast %cst_35 : f32 to vector<16x128xf32>
    %61 = arith.select %2, %59, %60 : vector<16x128xi1>, vector<16x128xf32>
    %c15_i32_36 = arith.constant 15 : i32
    %62 = tpu.dynamic_rotate %58 by %c15_i32_36 dim 0 : vector<16x128xf32>, i32 -> vector<16x128xf32>
    %cst_37 = arith.constant 0.000000e+00 : f32
    %63 = vector.broadcast %cst_37 : f32 to vector<16x128xf32>
    %64 = arith.select %4, %62, %63 : vector<16x128xi1>, vector<16x128xf32>
    %65 = tpu.concatenate %61, %58, %64 in 1 : vector<16x128xf32>, vector<16x128xf32>, vector<16x128xf32> -> vector<16x384xf32>
    %66 = arith.truncf %65 : vector<16x384xf32> to vector<16x384xbf16>
    %c3 = arith.constant 3 : index
    %c0_38 = arith.constant 0 : index
    %c0_39 = arith.constant 0 : index
    %67 = vector.load %arg2[%c3, %c0_38, %c0_39] : memref<4x384x128xbf16, #tpu.memory_space<vmem>>, vector<1x384x128xbf16>
    %68 = vector.shape_cast %67 : vector<1x384x128xbf16> to vector<384x128xbf16>
    %cst_40 = arith.constant dense<0.000000e+00> : vector<16x128xf32>
    %69 = tpu.matmul %66, %68, %cst_40 {dimension_numbers = #tpu.dot_dimension_numbers<[1], [0], [0], [1], [0, 0, 1, 1], [], []>} : vector<16x384xbf16>, vector<384x128xbf16>, vector<16x128xf32> -> vector<16x128xf32>
    %c3_41 = arith.constant 3 : index
    %c0_42 = arith.constant 0 : index
    %c0_43 = arith.constant 0 : index
    %70 = vector.load %arg3[%c3_41, %c0_42, %c0_43] : memref<4x1x128xf32, #tpu.memory_space<vmem>>, vector<1x1x128xf32>
    %71 = vector.shape_cast %70 : vector<1x1x128xf32> to vector<1x128xf32>
    %72 = vector.broadcast %71 : vector<1x128xf32> to vector<16x128xf32>
    %73 = arith.addf %69, %72 : vector<16x128xf32>
    %cst_44 = arith.constant 0.000000e+00 : f32
    %74 = vector.broadcast %cst_44 : f32 to vector<16x128xf32>
    %75 = arith.maximumf %73, %74 : vector<16x128xf32>
    %76 = arith.addf %41, %75 : vector<16x128xf32>
    %c0_45 = arith.constant 0 : index
    %c0_46 = arith.constant 0 : index
    %c0_47 = arith.constant 0 : index
    %77 = vector.load %arg4[%c0_45, %c0_46, %c0_47] : memref<3x384x128xbf16, #tpu.memory_space<vmem>>, vector<1x384x128xbf16>
    %78 = vector.shape_cast %77 : vector<1x384x128xbf16> to vector<384x128xbf16>
    %cst_48 = arith.constant dense<0.000000e+00> : vector<16x128xf32>
    %79 = tpu.matmul %14, %78, %cst_48 {dimension_numbers = #tpu.dot_dimension_numbers<[1], [0], [0], [1], [0, 0, 1, 1], [], []>} : vector<16x384xbf16>, vector<384x128xbf16>, vector<16x128xf32> -> vector<16x128xf32>
    %c1_49 = arith.constant 1 : index
    %c0_50 = arith.constant 0 : index
    %c0_51 = arith.constant 0 : index
    %80 = vector.load %arg4[%c1_49, %c0_50, %c0_51] : memref<3x384x128xbf16, #tpu.memory_space<vmem>>, vector<1x384x128xbf16>
    %81 = vector.shape_cast %80 : vector<1x384x128xbf16> to vector<384x128xbf16>
    %cst_52 = arith.constant dense<0.000000e+00> : vector<16x128xf32>
    %82 = tpu.matmul %49, %81, %cst_52 {dimension_numbers = #tpu.dot_dimension_numbers<[1], [0], [0], [1], [0, 0, 1, 1], [], []>} : vector<16x384xbf16>, vector<384x128xbf16>, vector<16x128xf32> -> vector<16x128xf32>
    %83 = arith.addf %79, %82 : vector<16x128xf32>
    %c1_i32_53 = arith.constant 1 : i32
    %84 = tpu.dynamic_rotate %76 by %c1_i32_53 dim 0 : vector<16x128xf32>, i32 -> vector<16x128xf32>
    %cst_54 = arith.constant 0.000000e+00 : f32
    %85 = vector.broadcast %cst_54 : f32 to vector<16x128xf32>
    %86 = arith.select %2, %84, %85 : vector<16x128xi1>, vector<16x128xf32>
    %c15_i32_55 = arith.constant 15 : i32
    %87 = tpu.dynamic_rotate %76 by %c15_i32_55 dim 0 : vector<16x128xf32>, i32 -> vector<16x128xf32>
    %cst_56 = arith.constant 0.000000e+00 : f32
    %88 = vector.broadcast %cst_56 : f32 to vector<16x128xf32>
    %89 = arith.select %4, %87, %88 : vector<16x128xi1>, vector<16x128xf32>
    %90 = tpu.concatenate %86, %76, %89 in 1 : vector<16x128xf32>, vector<16x128xf32>, vector<16x128xf32> -> vector<16x384xf32>
    %91 = arith.truncf %90 : vector<16x384xf32> to vector<16x384xbf16>
    %c2_57 = arith.constant 2 : index
    %c0_58 = arith.constant 0 : index
    %c0_59 = arith.constant 0 : index
    %92 = vector.load %arg4[%c2_57, %c0_58, %c0_59] : memref<3x384x128xbf16, #tpu.memory_space<vmem>>, vector<1x384x128xbf16>
    %93 = vector.shape_cast %92 : vector<1x384x128xbf16> to vector<384x128xbf16>
    %cst_60 = arith.constant dense<0.000000e+00> : vector<16x128xf32>
    %94 = tpu.matmul %91, %93, %cst_60 {dimension_numbers = #tpu.dot_dimension_numbers<[1], [0], [0], [1], [0, 0, 1, 1], [], []>} : vector<16x384xbf16>, vector<384x128xbf16>, vector<16x128xf32> -> vector<16x128xf32>
    %95 = arith.addf %83, %94 : vector<16x128xf32>
    %c0_61 = arith.constant 0 : index
    %c0_62 = arith.constant 0 : index
    %96 = vector.load %arg5[%c0_61, %c0_62] : memref<1x128xf32, #tpu.memory_space<vmem>>, vector<1x128xf32>
    %97 = vector.broadcast %96 : vector<1x128xf32> to vector<16x128xf32>
    %98 = arith.addf %95, %97 : vector<16x128xf32>
    %cst_63 = arith.constant dense<0.000000e+00> : vector<128xf32>
    %99 = vector.multi_reduction <add>, %98, %cst_63 [0] : vector<16x128xf32> to vector<128xf32>
    %100 = vector.shape_cast %99 : vector<128xf32> to vector<1x128xf32>
    %c0_64 = arith.constant 0 : index
    %c0_65 = arith.constant 0 : index
    %101 = vector.load %arg6[%c0_64, %c0_65] : memref<128x2xf32, #tpu.memory_space<vmem>>, vector<128x2xf32>
    %cst_66 = arith.constant dense<0.000000e+00> : vector<1x2xf32>
    %102 = tpu.matmul %100, %101, %cst_66 {dimension_numbers = #tpu.dot_dimension_numbers<[1], [0], [0], [1], [0, 0, 1, 1], [], []>} : vector<1x128xf32>, vector<128x2xf32>, vector<1x2xf32> -> vector<1x2xf32>
    %cst_67 = arith.constant 0.000000e+00 : f32
    %103 = vector.broadcast %cst_67 : f32 to vector<1x2xf32>
    %104 = arith.maximumf %102, %103 : vector<1x2xf32>
    %c0_68 = arith.constant 0 : index
    %c0_69 = arith.constant 0 : index
    %105 = vector.load %arg7[%c0_68, %c0_69] : memref<2x128xf32, #tpu.memory_space<vmem>>, vector<2x128xf32>
    %cst_70 = arith.constant dense<0.000000e+00> : vector<1x128xf32>
    %106 = tpu.matmul %104, %105, %cst_70 {dimension_numbers = #tpu.dot_dimension_numbers<[1], [0], [0], [1], [0, 0, 1, 1], [], []>} : vector<1x2xf32>, vector<2x128xf32>, vector<1x128xf32> -> vector<1x128xf32>
    %107 = arith.negf %106 : vector<1x128xf32>
    %108 = math.exp %107 : vector<1x128xf32>
    %cst_71 = arith.constant 1.000000e+00 : f32
    %109 = vector.broadcast %cst_71 : f32 to vector<1x128xf32>
    %110 = arith.addf %109, %108 : vector<1x128xf32>
    %111 = arith.divf %109, %110 : vector<1x128xf32>
    %112 = vector.broadcast %111 : vector<1x128xf32> to vector<16x128xf32>
    %113 = arith.mulf %98, %112 : vector<16x128xf32>
    %cst_72 = arith.constant 0.000000e+00 : f32
    %114 = vector.broadcast %cst_72 : f32 to vector<16x128xf32>
    %115 = arith.maximumf %113, %114 : vector<16x128xf32>
    %116 = arith.addf %115, %6 : vector<16x128xf32>
    %c1_i32_73 = arith.constant 1 : i32
    %117 = tpu.dynamic_rotate %116 by %c1_i32_73 dim 0 : vector<16x128xf32>, i32 -> vector<16x128xf32>
    %cst_74 = arith.constant 0.000000e+00 : f32
    %118 = vector.broadcast %cst_74 : f32 to vector<16x128xf32>
    %119 = arith.select %2, %117, %118 : vector<16x128xi1>, vector<16x128xf32>
    %c15_i32_75 = arith.constant 15 : i32
    %120 = tpu.dynamic_rotate %116 by %c15_i32_75 dim 0 : vector<16x128xf32>, i32 -> vector<16x128xf32>
    %cst_76 = arith.constant 0.000000e+00 : f32
    %121 = vector.broadcast %cst_76 : f32 to vector<16x128xf32>
    %122 = arith.select %4, %120, %121 : vector<16x128xi1>, vector<16x128xf32>
    %123 = tpu.concatenate %119, %116, %122 in 1 : vector<16x128xf32>, vector<16x128xf32>, vector<16x128xf32> -> vector<16x384xf32>
    %124 = arith.truncf %123 : vector<16x384xf32> to vector<16x384xbf16>
    %c0_77 = arith.constant 0 : index
    %c0_78 = arith.constant 0 : index
    %125 = vector.load %arg8[%c0_77, %c0_78] : memref<384x256xbf16, #tpu.memory_space<vmem>>, vector<384x256xbf16>
    %cst_79 = arith.constant dense<0.000000e+00> : vector<16x256xf32>
    %126 = tpu.matmul %124, %125, %cst_79 {dimension_numbers = #tpu.dot_dimension_numbers<[1], [0], [0], [1], [0, 0, 1, 1], [], []>} : vector<16x384xbf16>, vector<384x256xbf16>, vector<16x256xf32> -> vector<16x256xf32>
    %c0_80 = arith.constant 0 : index
    %c0_81 = arith.constant 0 : index
    %127 = vector.load %arg9[%c0_80, %c0_81] : memref<1x256xf32, #tpu.memory_space<vmem>>, vector<1x256xf32>
    %128 = vector.broadcast %127 : vector<1x256xf32> to vector<16x256xf32>
    %129 = arith.addf %126, %128 : vector<16x256xf32>
    %130 = vector.extract_strided_slice %129 {offsets = [0, 0], sizes = [16, 128], strides = [1, 1]} : vector<16x256xf32> to vector<16x128xf32>
    %131 = vector.extract_strided_slice %129 {offsets = [0, 128], sizes = [16, 128], strides = [1, 1]} : vector<16x256xf32> to vector<16x128xf32>
    %132 = arith.negf %130 : vector<16x128xf32>
    %133 = math.exp %132 : vector<16x128xf32>
    %cst_82 = arith.constant 1.000000e+00 : f32
    %134 = vector.broadcast %cst_82 : f32 to vector<16x128xf32>
    %135 = arith.addf %134, %133 : vector<16x128xf32>
    %136 = arith.divf %134, %135 : vector<16x128xf32>
    %137 = math.tanh %131 : vector<16x128xf32>
    %138 = arith.mulf %136, %137 : vector<16x128xf32>
    %cst_83 = arith.constant 0.000000e+00 : f32
    %139 = vector.broadcast %cst_83 : f32 to vector<16x128xf32>
    %140 = arith.cmpf oge, %138, %139 : vector<16x128xf32>
    %cst_84 = arith.constant 2.000000e-01 : f32
    %141 = vector.broadcast %cst_84 : f32 to vector<16x128xf32>
    %142 = arith.mulf %141, %138 : vector<16x128xf32>
    %143 = arith.select %140, %138, %142 : vector<16x128xi1>, vector<16x128xf32>
    %cst_85 = arith.constant dense<0.000000e+00> : vector<128xf32>
    %144 = vector.multi_reduction <add>, %143, %cst_85 [0] : vector<16x128xf32> to vector<128xf32>
    %145 = vector.shape_cast %144 : vector<128xf32> to vector<1x128xf32>
    %c0_86 = arith.constant 0 : index
    %c0_87 = arith.constant 0 : index
    %146 = vector.load %arg10[%c0_86, %c0_87] : memref<128x2xf32, #tpu.memory_space<vmem>>, vector<128x2xf32>
    %cst_88 = arith.constant dense<0.000000e+00> : vector<1x2xf32>
    %147 = tpu.matmul %145, %146, %cst_88 {dimension_numbers = #tpu.dot_dimension_numbers<[1], [0], [0], [1], [0, 0, 1, 1], [], []>} : vector<1x128xf32>, vector<128x2xf32>, vector<1x2xf32> -> vector<1x2xf32>
    %cst_89 = arith.constant 0.000000e+00 : f32
    %148 = vector.broadcast %cst_89 : f32 to vector<1x2xf32>
    %149 = arith.maximumf %147, %148 : vector<1x2xf32>
    %c0_90 = arith.constant 0 : index
    %c0_91 = arith.constant 0 : index
    %150 = vector.load %arg11[%c0_90, %c0_91] : memref<2x128xf32, #tpu.memory_space<vmem>>, vector<2x128xf32>
    %cst_92 = arith.constant dense<0.000000e+00> : vector<1x128xf32>
    %151 = tpu.matmul %149, %150, %cst_92 {dimension_numbers = #tpu.dot_dimension_numbers<[1], [0], [0], [1], [0, 0, 1, 1], [], []>} : vector<1x2xf32>, vector<2x128xf32>, vector<1x128xf32> -> vector<1x128xf32>
    %152 = arith.negf %151 : vector<1x128xf32>
    %153 = math.exp %152 : vector<1x128xf32>
    %cst_93 = arith.constant 1.000000e+00 : f32
    %154 = vector.broadcast %cst_93 : f32 to vector<1x128xf32>
    %155 = arith.addf %154, %153 : vector<1x128xf32>
    %156 = arith.divf %154, %155 : vector<1x128xf32>
    %157 = vector.broadcast %156 : vector<1x128xf32> to vector<16x128xf32>
    %158 = arith.mulf %143, %157 : vector<16x128xf32>
    %cst_94 = arith.constant 0.000000e+00 : f32
    %159 = vector.broadcast %cst_94 : f32 to vector<16x128xf32>
    %160 = arith.cmpf oge, %158, %159 : vector<16x128xf32>
    %cst_95 = arith.constant 2.000000e-01 : f32
    %161 = vector.broadcast %cst_95 : f32 to vector<16x128xf32>
    %162 = arith.mulf %161, %158 : vector<16x128xf32>
    %163 = arith.select %160, %158, %162 : vector<16x128xi1>, vector<16x128xf32>
    %c0_96 = arith.constant 0 : index
    %c0_97 = arith.constant 0 : index
    %c0_98 = arith.constant 0 : index
    %164 = vector.load %arg12[%c0_96, %c0_97, %c0_98] : memref<1x16x128xf32, #tpu.memory_space<vmem>>, vector<1x16x128xf32>
    %165 = vector.shape_cast %164 : vector<1x16x128xf32> to vector<16x128xf32>
    %166 = vector.shape_cast %163 : vector<16x128xf32> to vector<1x16x128xf32>
    tpu.vector_store %arg12[%c0_96, %c0_97, %c0_98], %166 {strides = array<i32>} : memref<1x16x128xf32, #tpu.memory_space<vmem>>, vector<1x16x128xf32>,
    return
  }
  func.func @transform_0(%arg0: i32) -> (i32, i32, i32) {
    %c0_i32 = arith.constant 0 : i32
    %c0_i32_0 = arith.constant 0 : i32
    %c0_i32_1 = arith.constant 0 : i32
    return %arg0, %c0_i32, %c0_i32_0 : i32, i32, i32
  }
  func.func @transform_1(%arg0: i32) -> (i32, i32, i32) {
    %c0_i32 = arith.constant 0 : i32
    %c0_i32_0 = arith.constant 0 : i32
    %c0_i32_1 = arith.constant 0 : i32
    %c0_i32_2 = arith.constant 0 : i32
    return %c0_i32, %c0_i32_0, %c0_i32_1 : i32, i32, i32
  }
  func.func @transform_2(%arg0: i32) -> (i32, i32, i32) {
    %c0_i32 = arith.constant 0 : i32
    %c0_i32_0 = arith.constant 0 : i32
    %c0_i32_1 = arith.constant 0 : i32
    %c0_i32_2 = arith.constant 0 : i32
    return %c0_i32, %c0_i32_0, %c0_i32_1 : i32, i32, i32
  }
  func.func @transform_3(%arg0: i32) -> (i32, i32, i32) {
    %c0_i32 = arith.constant 0 : i32
    %c0_i32_0 = arith.constant 0 : i32
    %c0_i32_1 = arith.constant 0 : i32
    %c0_i32_2 = arith.constant 0 : i32
    return %c0_i32, %c0_i32_0, %c0_i32_1 : i32, i32, i32
  }
  func.func @transform_4(%arg0: i32) -> (i32, i32) {
    %c0_i32 = arith.constant 0 : i32
    %c0_i32_0 = arith.constant 0 : i32
    %c0_i32_1 = arith.constant 0 : i32
    return %c0_i32, %c0_i32_0 : i32, i32
  }
  func.func @transform_5(%arg0: i32) -> (i32, i32) {
    %c0_i32 = arith.constant 0 : i32
    %c0_i32_0 = arith.constant 0 : i32
    %c0_i32_1 = arith.constant 0 : i32
    return %c0_i32, %c0_i32_0 : i32, i32
  }
  func.func @transform_6(%arg0: i32) -> (i32, i32) {
    %c0_i32 = arith.constant 0 : i32
    %c0_i32_0 = arith.constant 0 : i32
    %c0_i32_1 = arith.constant 0 : i32
    return %c0_i32, %c0_i32_0 : i32, i32
  }
  func.func @transform_7(%arg0: i32) -> (i32, i32) {
    %c0_i32 = arith.constant 0 : i32
    %c0_i32_0 = arith.constant 0 : i32
    %c0_i32_1 = arith.constant 0 : i32
    return %c0_i32, %c0_i32_0 : i32, i32
  }
  func.func @transform_8(%arg0: i32) -> (i32, i32) {
    %c0_i32 = arith.constant 0 : i32
    %c0_i32_0 = arith.constant 0 : i32
    %c0_i32_1 = arith.constant 0 : i32
    return %c0_i32, %c0_i32_0 : i32, i32
  }
  func.func @transform_9(%arg0: i32) -> (i32, i32) {
    %c0_i32 = arith.constant 0 : i32
    %c0_i32_0 = arith.constant 0 : i32
    %c0_i32_1 = arith.constant 0 : i32
    return %c0_i32, %c0_i32_0 : i32, i32
  }
  func.func @transform_10(%arg0: i32) -> (i32, i32) {
    %c0_i32 = arith.constant 0 : i32
    %c0_i32_0 = arith.constant 0 : i32
    %c0_i32_1 = arith.constant 0 : i32
    return %c0_i32, %c0_i32_0 : i32, i32
  }
  func.func @transform_11(%arg0: i32) -> (i32, i32, i32) {
    %c0_i32 = arith.constant 0 : i32
    %c0_i32_0 = arith.constant 0 : i32
    %c0_i32_1 = arith.constant 0 : i32
    return %arg0, %c0_i32, %c0_i32_0 : i32, i32, i32
  }
}

</mosaic_0001>

<bundles_post_ra>
// kernel: tpu_custom_call.1
= control target key start
LH: loop header
LB: loop body
LE: loop exit
PB: predicated region body
PF: predicated region fallthrough
CT: control target
= control target key end

     0   :  { %s4861_s0 = inlined_call_operand.vmem [shape: f32[2,16,128], index: 0, kind: input, shape index: {}]   ;;  %s4862_s1 = inlined_call_operand.hbm [shape: bf16[4,384,128], index: 1, kind: input, shape index: {}]   ;;  %s4863_s2 = inlined_call_operand.vmem [shape: f32[4,1,128], index: 2, kind: input, shape index: {}]   ;;  %s4864_s3 = inlined_call_operand.hbm [shape: bf16[3,384,128], index: 3, kind: input, shape index: {}]   ;;  %s4865_s4 = inlined_call_operand.vmem [shape: f32[1,128], index: 4, kind: input, shape index: {}]   ;;  %s4866_s5 = inlined_call_operand.vmem [shape: f32[128,2], index: 5, kind: input, shape index: {}]   ;;  %s4867_s6 = inlined_call_operand.vmem [shape: f32[2,128], index: 6, kind: input, shape index: {}]   ;;  %s4868_s7 = inlined_call_operand.hbm [shape: bf16[384,256], index: 7, kind: input, shape index: {}]   ;;  %s4869_s8 = inlined_call_operand.vmem [shape: f32[1,256], index: 8, kind: input, shape index: {}]   ;;  %s4870_s9 = inlined_call_operand.vmem [shape: f32[128,2], index: 9, kind: input, shape index: {}]   ;;  %s4871_s10 = inlined_call_operand.vmem [shape: f32[2,128], index: 10, kind: input, shape index: {}]   ;;  %s4872_s11 = inlined_call_operand.hbm [shape: f32[2,16,128], index: 11, kind: output, shape index: {}]  }
   0x1   :  { %4877 = sst [smem:[#allocation16_spill]] %s4862_s1 }
   0x2   :  { %4878 = sst [smem:[#allocation17_spill]] %s4864_s3 }
   0x3   :  { %16 = vsyncpa [#allocation3], 0 }
   0x4   :  { %17 = vsyncpa [#allocation6], 0 }
   0x5   :  { %18 = vsyncpa [#allocation4], 0 }
   0x6   :  { %20 = vsyncpa [#allocation4 + $0x1], 0  ;;  %s4454_s17 = smov 0   ;;  %s4456_s18 = smov 0  }
   0x7   :  { %s4458_s19 = smov 0   ;;  %s4460_s20 = smov 0  }
   0x8 LB: > { %4879 = sst [smem:[#allocation12_spill]] %s4378_s19  ;;  %s4475_s21 = sadd.s32 4294967295, %s4382_s20   ;;  %s4382_s20 = sphi %s4460_s20, %s4894_s20   ;;  %s4378_s19 = sphi %s4458_s19, %s4896_s19   ;;  %s4374_s18 = sphi %s4456_s18, %s4898_s18   ;;  %s4370_s17 = sphi %s4454_s17, %s4897_s17  }
   0x9   : > { %s2953_s22 = sadd.s32 4294967294, %s4382_s20   ;;  %s4479_s23 = sadd.s32 1, %s4382_s20  }
   0xa   : > { %4880 = sst [smem:[#allocation13_spill]] %s4479_s23  ;;  %s269_s24 = sadd.s32 1, %s4378_s19 }
   0xb   : > { %s266_s25 = ssub.s32 %s4382_s20, %s4479_s23  ;;  %p279_p0 = scmp.ne.s32.totalorder %s4378_s19, %s4374_s18 }
   0xc   : > { %p267_p1 = scmp.eq.s32.totalorder %s266_s25, 0  ;;  %p280_p2 = scmp.eq.s32.totalorder %s4475_s21, 1 }
   0xd   : > { %p285_p3 = scmp.ne.s32.totalorder %s4374_s18, %s4370_s17  ;;  %p286_p4 = scmp.eq.s32.totalorder %s2953_s22, 1 }
   0xe   : > { %s4490_s26 = scalar_select %p267_p1, %s4378_s19, %s269_s24  }
   0xf   : > { %p4492_p5 = por %p280_p2, %p279_p0  ;;  %p4496_p6 = por %p286_p4, %p285_p3 }
  0x10   : > { %4881 = sst [smem:[#allocation14_spill]] %s4490_s26  ;;  %p2954_p7 = scmp.ge.s32.totalorder %s4382_s20, 1 }
  0x11   : > { %s4883_s28 = scalar_select %p4496_p6, 1, 0 }
  0x12   : > { %p293_p8 = scmp.lt.s32.totalorder %s4382_s20, 3  ;;  %p4146_p9 = scmp.eq.s32.totalorder %s4475_s21, 0 }
  0x13   : > { %4884 = sst [smem:[#allocation15_spill]] %s4883_s28  ;;  %s4384_s24 = smov [#allocation5]  }
  0x14   : > { %p4503_p10 = pnand %p2954_p7, %p293_p8  ;;  %s4886_s3 = sld [smem:[#allocation17_spill]] }
  0x15   : > { %s4887_s1 = sld [smem:[#allocation16_spill]]  ;;  %s323_s25 = sshll.u32 %s4384_s24, 4  ;;  %s324_s25 = int_to_ptr.vmem [resolvable:$true] %s323_s25 }
  0x16   : > { %p4132_p11 = pneg %p4503_p10  ;;  %s4385_s30 = smov 64  }
  0x17   : > { %s4386_s12 = smov 4   ;;  %s4388_s19 = smov [#allocation7]  }
  0x18   : > { %p4517_p12 = pnand %p4146_p9, %p4132_p11  ;;  %s346_s23 = sshll.u32 %s4388_s19, 4  ;;  %s347_s23 = int_to_ptr.vmem [resolvable:$true] %s346_s23 }
  0x19   : > { %s4389_s24 = smov 128   ;;  %s4390_s28 = smov 8  }
  0x1a   : > { %s321_s13 = sshll.u32 %s4886_s3, 4  ;;  %s4387_s3 = smov [#allocation2]   ;;  %s322_s13 = int_to_ptr.hbm [resolvable:$true] %s321_s13 }
  0x1b   : > { %s304_s16 = sshll.u32 %s4887_s1, 4  ;;  %s306_s26 = sshll.u32 %s4387_s3, 4  ;;  %s305_s16 = int_to_ptr.hbm [resolvable:$true] %s304_s16  ;;  %s307_s26 = int_to_ptr.vmem [resolvable:$true] %s306_s26 }
  0x1c   : > { %4138 = dma.hbm_to_vmem [thread:$0]  (!%p4517_p12), %s322_s13, 9216, %s324_s25, [#allocation6], %s4385_s30, %s4385_s30, %s4386_s12  }
  0x1d   : > { %s344_s1 = sshll.u32 %s4868_s7, 4  ;;  %379 = sbr.rel (%p4503_p10) target bundleno = 1629 (0x65d), region = 64  ;;  %s345_s1 = int_to_ptr.hbm [resolvable:$true] %s344_s1 }
  0x1e   : > { %4135 = dma.hbm_to_vmem [thread:$0]  (!%p4517_p12), %s305_s16, 12288, %s307_s26, [#allocation3], %s4385_s30, %s4385_s30, %s4386_s12  }
  0x1f   : > { %4141 = dma.hbm_to_vmem [thread:$0]  (!%p4517_p12), %s345_s1, 6144, %s347_s23, [#allocation6], %s4389_s24, %s4389_s24, %s4390_s28  }
  0x22   : > { %4357 = dma.done.wait (%p4146_p9), [#allocation3], 12288  }
  0x23   : > { %4359 = vsyncadd (%p4146_p9), [#allocation3], 4294955008 }
  0x24   : > { %4361 = dma.done.wait (%p4146_p9), [#allocation6], 15360  }
  0x25   : > { %4363 = vsyncadd (%p4146_p9), [#allocation6], 4294951936  ;;  %v3908_v0 = vld [vmem:[#allocation2 + $0x38] sm:$0xff]  ;;  %v3907_v3 = vld [vmem:[#allocation2 + $0x30] sm:$0xff]  ;;  %p430_p13 = scmp.lt.s32.totalorder %s4475_s21, 1  ;;  %v435_v17 = vlaneseq  ;;  %vm4391_vm4 = vmmov 1  }
  0x26   : > { %v3916_v1 = vld [vmem:[#allocation2 + $0x78] sm:$0xff]  ;;  %657 = vmatpush.bf16.msra.mxu0 %v3908_v0  ;;  %v3915_v4 = vld [vmem:[#allocation2 + $0x70] sm:$0xff]  ;;  %v3906_v6 = vld [vmem:[#allocation2 + $0x28] sm:$0xff]  ;;  %vm2252_vm7 = vcmask 1041408   ;;  %vm2248_vm8 = vcmask 15360   ;;  %s427_s13 = sand.u32 1, %s4374_s18  }
  0x27   : > { %v3924_v2 = vld [vmem:[#allocation2 + $0xb8] sm:$0xff]  ;;  %671 = vmatpush.bf16.msra.mxu1 %v3916_v1  ;;  %v3923_v5 = vld [vmem:[#allocation2 + $0xb0] sm:$0xff]  ;;  %v3914_v7 = vld [vmem:[#allocation2 + $0x68] sm:$0xff]  ;;  %s431_s1 = scalar_select %p430_p13, %s4475_s21, 1  ;;  %v4547_v21 = vshrl.u32 %v435_v17, 7 }
  0x28   : > { %685 = vmatpush.bf16.msra.mxu2 %v3924_v2  ;;  %v3922_v8 = vld [vmem:[#allocation2 + $0xa8] sm:$0xff]  ;;  %v3932_v9 = vld [vmem:[#allocation2 + $0xf8] sm:$0xff]  ;;  %v3905_v10 = vld [vmem:[#allocation2 + $0x20] sm:$0xff]  ;;  %s2963_s16 = sshll.u32 %s427_s13, 4  ;;  %s4117_s22 = sshll.u32 %s4475_s21, 4 }
  0x29   : > { %v3913_v11 = vld [vmem:[#allocation2 + $0x60] sm:$0xff]  ;;  %914 = vmatpush.bf16.msra.mxu3 %v3932_v9  ;;  %v3931_v13 = vld [vmem:[#allocation2 + $0xf0] sm:$0xff]  ;;  %s3900_s3 = sshll.u32 %s431_s1, 4  ;;  %v3904_v14 = vld [vmem:[#allocation2 + $0x18] sm:$0xff]  ;;  %vm446_vm0 = vcmp.lt.s32.totalorder %v4547_v21, 1  ;;  %vm453_vm1 = vcmp.lt.s32.totalorder %v4547_v21, 7  ;;  %s2856_s12 = scalar_lea.hbm %s4872_s11, %s4117_s22 }
  0x2a   : > { %658 = vmatpush.bf16.msra.mxu0 %v3907_v3  ;;  %v3921_v12 = vld [vmem:[#allocation2 + $0xa0] sm:$0xff]  ;;  %v3912_v15 = vld [vmem:[#allocation2 + $0x58] sm:$0xff]  ;;  %s4545_s26 = scalar_lea.vmem %s4861_s0, %s3900_s3  ;;  %v3903_v18 = vld [vmem:[#allocation2 + $0x10] sm:$0xff]  ;;  %v437_v31 = vadd.s32 8, %v4547_v21  ;;  %vm438_vm2 = vcmp.gt.s32.totalorder %v4547_v21, 0  ;;  %s429_s14 = scalar_lea.vmem [#allocation8], %s2963_s16 }
  0x2b   : > { %672 = vmatpush.bf16.msra.mxu1 %v3915_v4  ;;  %v3920_v16 = vld [vmem:[#allocation2 + $0x98] sm:$0xff]  ;;  %v3911_v19 = vld [vmem:[#allocation2 + $0x50] sm:$0xff]  ;;  %v4550_v22 = vld [vmem:[%s4545_s26] sm:$0xff]  ;;  %s2857_s15 = sshll.u32 %s429_s14, 4  ;;  %s2859_s24 = sshll.u32 %s2856_s12, 4  ;;  %s2858_s15 = int_to_ptr.vmem [resolvable:$true] %s2857_s15  ;;  %s2860_s24 = int_to_ptr.hbm [resolvable:$true] %s2859_s24 }
  0x2c   : > { %686 = vmatpush.bf16.msra.mxu2 %v3923_v5  ;;  %v3919_v20 = vld [vmem:[#allocation2 + $0x90] sm:$0xff]  ;;  %v4553_v23 = vld [vmem:[%s4545_s26 + $0x8] sm:$0xff]  ;;  %v444_v26 = vrot.slane %v4550_v22, 7  ;;  %v451_v29 = vrot.slane %v4550_v22, 1  ;;  %v3901_v32 = vld [vmem:[#allocation2] sm:$0xff]  ;;  %vm441_vm3 = vcmp.lt.s32.totalorder %v437_v31, 15 }
  0x2d   : > { %915 = vmatpush.bf16.msra.mxu3 %v3931_v13  ;;  %v3902_v24 = vld [vmem:[#allocation2 + $0x8] sm:$0xff]  ;;  %v445_v27 = vrot.slane %v4553_v23, 7  ;;  %v452_v30 = vrot.slane %v4553_v23, 1  ;;  %v3909_v33 = vld [vmem:[#allocation2 + $0x40] sm:$0xff]  ;;  %v3940_v39 = vld [vmem:[#allocation2 + $0x138] sm:$0xff]  ;;  %v4575_v42 = vpack.c.bf16 %v4553_v23, %v4550_v22  ;;  %s2845_s21 = scalar_lea.sflag [#allocation4], %s427_s13 }
  0x2e   : > { %659 = vmatpush.bf16.msra.mxu0 %v3906_v6  ;;  %v3910_v25 = vld [vmem:[#allocation2 + $0x48] sm:$0xff]  ;;  %v3917_v36 = vld [vmem:[#allocation2 + $0x80] sm:$0xff]  ;;  %v3948_v40 = vld [vmem:[#allocation2 + $0x178] sm:$0xff]  ;;  %s4326_s1 = sshra.s32 %s2860_s24, 4  ;;  %s4332_s23 = scalar_lea.hbm %s4872_s11, 32  ;;  %s4327_s1 = int_to_ptr.hbm [resolvable:$true] %s4326_s1 }
  0x2f   : > { %673 = vmatpush.bf16.msra.mxu1 %v3914_v7  ;;  %v3918_v28 = vld [vmem:[#allocation2 + $0x88] sm:$0xff]  ;;  %v447_v34 = vsel %vm446_vm0, %v444_v26, %v445_v27  ;;  %v448_v35 = vsel %vm446_vm0, %v445_v27, %v444_v26  ;;  %v454_v37 = vsel %vm453_vm1, %v451_v29, %v452_v30  ;;  %v455_v38 = vsel %vm453_vm1, %v452_v30, %v451_v29  ;;  %vm4577_vm5 = vmpackc.low %vm4391_vm4, %vm438_vm2  ;;  %v3939_v46 = vld [vmem:[#allocation2 + $0x130] sm:$0xff]  ;;  %s4328_s3 = scalar_lea.hbm %s4327_s1, 16  ;;  %p4333_p3 = scmp.lt.s32.totalorder %s4327_s1, %s4872_s11 }
  0x30   : > { %687 = vmatpush.bf16.msra.mxu2 %v3922_v8  ;;  %v4571_v41 = vpack.c.bf16 %v447_v34, %v448_v35  ;;  %v4581_v44 = vpack.c.bf16 %v455_v38, %v454_v37  ;;  %vm4583_vm6 = vmpackc.low %vm441_vm3, %vm4391_vm4  ;;  %v3947_v47 = vld [vmem:[#allocation2 + $0x170] sm:$0xff]  ;;  %v3938_v48 = vld [vmem:[#allocation2 + $0x128] sm:$0xff]  ;;  %p4329_p0 = scmp.ne.s32.totalorder %s4327_s1, %s4328_s3  ;;  %p4334_p4 = scmp.lt.s32.totalorder %s4332_s23, %s4328_s3 }
  0x31   : > { %v3930_v49 = vld [vmem:[#allocation2 + $0xe8] sm:$0xff]  ;;  %v3937_v51 = vld [vmem:[#allocation2 + $0x120] sm:$0xff]  ;;  %v3936_v54 = vld [vmem:[#allocation2 + $0x118] sm:$0xff] }
  0x32   : > { %660 = vmatpush.bf16.msra.mxu0 %v3905_v10  ;;  %v3946_v50 = vld [vmem:[#allocation2 + $0x168] sm:$0xff]  ;;  %916 = vmatpush.bf16.msra.mxu3 %v3930_v49  ;;  %v3929_v52 = vld [vmem:[#allocation2 + $0xe0] sm:$0xff]  ;;  %v3928_v55 = vld [vmem:[#allocation2 + $0xd8] sm:$0xff]  ;;  %p4330_p1 = pnand %p4329_p0, %p4492_p5  ;;  %p4335_p7 = por %p4334_p4, %p4333_p3 }
  0x33   : > { %674 = vmatpush.bf16.msra.mxu1 %v3913_v11  ;;  %v3945_v53 = vld [vmem:[#allocation2 + $0x160] sm:$0xff]  ;;  %v3944_v56 = vld [vmem:[#allocation2 + $0x158] sm:$0xff]  ;;  %v3935_v57 = vld [vmem:[#allocation2 + $0x110] sm:$0xff] }
  0x34   : > { %688 = vmatpush.bf16.msra.mxu2 %v3921_v12  ;;  %v3927_v58 = vld [vmem:[#allocation2 + $0xd0] sm:$0xff]  ;;  %v3934_v60 = vld [vmem:[#allocation2 + $0x108] sm:$0xff]  ;;  %v3933_v63 = vld [vmem:[#allocation2 + $0x100] sm:$0xff]  ;;  %p4331_p2 = pneg %p4330_p1 }
  0x35   : > { %v3943_v59 = vld [vmem:[#allocation2 + $0x150] sm:$0xff]  ;;  %v3926_v61 = vld [vmem:[#allocation2 + $0xc8] sm:$0xff]  ;;  %v3925_v0 = vld [vmem:[#allocation2 + $0xc0] sm:$0xff] }
  0x36   : > { %661 = vmatpush.bf16.msra.mxu0 %v3904_v14  ;;  %917 = vmatpush.bf16.msra.mxu3 %v3929_v52  ;;  %v3942_v62 = vld [vmem:[#allocation2 + $0x148] sm:$0xff]  ;;  %v3941_v1 = vld [vmem:[#allocation2 + $0x140] sm:$0xff]  ;;  %v3972_v2 = vld [vmem:[#allocation2 + $0x238] sm:$0xff]  ;;  %p4336_p8 = pnand %p4335_p7, %p4331_p2 }
  0x37   : > { %675 = vmatpush.bf16.msra.mxu1 %v3912_v15  ;;  %v3964_v3 = vld [vmem:[#allocation2 + $0x1f8] sm:$0xff]  ;;  %v3971_v4 = vld [vmem:[#allocation2 + $0x230] sm:$0xff]  ;;  %v4195_v5 = vld [vmem:[%s4863_s2] ss:$0 sm:$0xff] }
  0x38   : > { %689 = vmatpush.bf16.msra.mxu2 %v3920_v16  ;;  %v3970_v6 = vld [vmem:[#allocation2 + $0x228] sm:$0xff]  ;;  %v3969_v35 = vld [vmem:[#allocation2 + $0x220] sm:$0xff]  ;;  %v3963_v37 = vld [vmem:[#allocation2 + $0x1f0] sm:$0xff] }
  0x39   : > { %v3968_v38 = vld [vmem:[#allocation2 + $0x218] sm:$0xff]  ;;  %v3966_v49 = vld [vmem:[#allocation2 + $0x208] sm:$0xff]  ;;  %v3965_v52 = vld [vmem:[#allocation2 + $0x200] sm:$0xff] }
  0x3a   : > { %662 = vmatpush.bf16.msra.mxu0 %v3903_v18  ;;  %918 = vmatpush.bf16.msra.mxu3 %v3928_v55  ;;  %v3959_v55 = vld [vmem:[#allocation2 + $0x1d0] sm:$0xff]  ;;  %v2365_v21 = vld [vmem:[%s4869_s8] sm:$0x3] }
  0x3b   : > { %676 = vmatpush.bf16.msra.mxu1 %v3911_v19  ;;  %v2764_v43 = vld [vmem:[%s4870_s9 + $0x70] sm:$0xff] }
  0x3c   : > { %690 = vmatpush.bf16.msra.mxu2 %v3919_v20 }
  0x3e   : > { %663 = vmatpush.bf16.msra.mxu0 %v3902_v24  ;;  %919 = vmatpush.bf16.msra.mxu3 %v3927_v58  ;;  %v3958_v58 = vld [vmem:[#allocation2 + $0x1c8] sm:$0xff] }
  0x3f   : > { %677 = vmatpush.bf16.msra.mxu1 %v3910_v25 }
  0x40   : > { %691 = vmatpush.bf16.msra.mxu2 %v3918_v28 }
  0x42   : > { %664 = vmatpush.bf16.msra.mxu0 %v3901_v32  ;;  %920 = vmatpush.bf16.msra.mxu3 %v3926_v61  ;;  %v3957_v61 = vld [vmem:[#allocation2 + $0x1c0] sm:$0xff] }
  0x43   : > { %678 = vmatpush.bf16.msra.mxu1 %v3909_v33 }
  0x44   : > { %692 = vmatpush.bf16.msra.mxu2 %v3917_v36  ;;  %v3956_v36 = vld [vmem:[#allocation2 + $0x1b8] sm:$0xff] }
  0x45   : > { %3064 = vmatmul.msk.bf16.vlgmr.msra.gmra.mxu0 %vm4577_vm5, %v4571_v41 }
  0x46   : > { %928 = vmatpush.bf16.msrb.mxu0 %v3940_v39  ;;  %679 = vmatmul.bf16.vlgmr.msra.gmra.mxu1 %v4575_v42  ;;  %v3955_v39 = vld [vmem:[#allocation2 + $0x1b0] sm:$0xff] }
  0x47   : > { %942 = vmatpush.bf16.msrb.mxu1 %v3948_v40  ;;  %3067 = vmatmul.msk.bf16.vlgmr.msra.gmra.mxu2 %vm4583_vm6, %v4581_v44  ;;  %v3962_v40 = vld [vmem:[#allocation2 + $0x1e8] sm:$0xff] }
  0x48   : > { %921 = vmatpush.bf16.msra.mxu3 %v3925_v0  ;;  %1173 = vmatpush.bf16.msrb.mxu2 %v3956_v36  ;;  %v4024_v0 = vld [vmem:[#allocation5 + $0xd8] sm:$0xff] }
  0x4a   : > { %929 = vmatpush.bf16.msrb.mxu0 %v3939_v46  ;;  %v3967_v46 = vld [vmem:[#allocation2 + $0x210] sm:$0xff] }
  0x4b   : > { %943 = vmatpush.bf16.msrb.mxu1 %v3947_v47  ;;  %v3954_v47 = vld [vmem:[#allocation2 + $0x1a8] sm:$0xff] }
  0x4c   : > { %1187 = vmatpush.bf16.msrb.mxu3 %v3964_v3  ;;  %1174 = vmatpush.bf16.msrb.mxu2 %v3955_v39  ;;  %v4022_v3 = vld [vmem:[#allocation5 + $0xc8] sm:$0xff]  ;;  %v3993_v39 = vld [vmem:[#allocation2 + $0x2e0] sm:$0xff] }
  0x4e   : > { %930 = vmatpush.bf16.msrb.mxu0 %v3938_v48  ;;  %v3961_v48 = vld [vmem:[#allocation2 + $0x1e0] sm:$0xff] }
  0x4f   : > { %944 = vmatpush.bf16.msrb.mxu1 %v3946_v50  ;;  %v3953_v50 = vld [vmem:[#allocation2 + $0x1a0] sm:$0xff] }
  0x50   : > { %1188 = vmatpush.bf16.msrb.mxu3 %v3963_v37  ;;  %1175 = vmatpush.bf16.msrb.mxu2 %v3954_v47 }
  0x52   : > { %931 = vmatpush.bf16.msrb.mxu0 %v3937_v51  ;;  %v3960_v51 = vld [vmem:[#allocation2 + $0x1d8] sm:$0xff] }
  0x53   : > { %945 = vmatpush.bf16.msrb.mxu1 %v3945_v53  ;;  %v3952_v53 = vld [vmem:[#allocation2 + $0x198] sm:$0xff] }
  0x54   : > { %1189 = vmatpush.bf16.msrb.mxu3 %v3962_v40  ;;  %1176 = vmatpush.bf16.msrb.mxu2 %v3953_v50  ;;  %v3976_v50 = vld [vmem:[#allocation2 + $0x258] sm:$0xff] }
  0x56   : > { %932 = vmatpush.bf16.msrb.mxu0 %v3936_v54  ;;  %v4028_v54 = vld [vmem:[#allocation5 + $0xf8] sm:$0xff] }
  0x57   : > { %946 = vmatpush.bf16.msrb.mxu1 %v3944_v56  ;;  %v3951_v56 = vld [vmem:[#allocation2 + $0x190] sm:$0xff] }
  0x58   : > { %1190 = vmatpush.bf16.msrb.mxu3 %v3961_v48  ;;  %1177 = vmatpush.bf16.msrb.mxu2 %v3952_v53  ;;  %v3974_v53 = vld [vmem:[#allocation2 + $0x248] sm:$0xff] }
  0x5a   : > { %933 = vmatpush.bf16.msrb.mxu0 %v3935_v57  ;;  %v4027_v57 = vld [vmem:[#allocation5 + $0xf0] sm:$0xff] }
  0x5b   : > { %947 = vmatpush.bf16.msrb.mxu1 %v3943_v59  ;;  %v3950_v59 = vld [vmem:[#allocation2 + $0x188] sm:$0xff] }
  0x5c   : > { %1191 = vmatpush.bf16.msrb.mxu3 %v3960_v51  ;;  %1178 = vmatpush.bf16.msrb.mxu2 %v3951_v56  ;;  %v3984_v51 = vld [vmem:[#allocation2 + $0x298] sm:$0xff] }
  0x5d   : > { %v4036_v56 = vld [vmem:[#allocation5 + $0x138] sm:$0xff] }
  0x5e   : > { %934 = vmatpush.bf16.msrb.mxu0 %v3934_v60  ;;  %v4026_v60 = vld [vmem:[#allocation5 + $0xe8] sm:$0xff] }
  0x5f   : > { %948 = vmatpush.bf16.msrb.mxu1 %v3942_v62  ;;  %v3949_v62 = vld [vmem:[#allocation2 + $0x180] sm:$0xff] }
  0x60   : > { %1192 = vmatpush.bf16.msrb.mxu3 %v3959_v55  ;;  %1179 = vmatpush.bf16.msrb.mxu2 %v3950_v59  ;;  %v3992_v55 = vld [vmem:[#allocation2 + $0x2d8] sm:$0xff]  ;;  %v4035_v59 = vld [vmem:[#allocation5 + $0x130] sm:$0xff] }
  0x62   : > { %935 = vmatpush.bf16.msrb.mxu0 %v3933_v63  ;;  %v4025_v63 = vld [vmem:[#allocation5 + $0xe0] sm:$0xff] }
  0x63   : > { %949 = vmatpush.bf16.msrb.mxu1 %v3941_v1  ;;  %v4023_v1 = vld [vmem:[#allocation5 + $0xd0] sm:$0xff] }
  0x64   : > { %1193 = vmatpush.bf16.msrb.mxu3 %v3958_v58  ;;  %1180 = vmatpush.bf16.msrb.mxu2 %v3949_v62  ;;  %v3991_v58 = vld [vmem:[#allocation2 + $0x2d0] sm:$0xff]  ;;  %v4034_v62 = vld [vmem:[#allocation5 + $0x128] sm:$0xff] }
  0x66   : > { %1201 = vmatpush.bf16.msra.mxu0 %v3972_v2  ;;  %v4196_v2 = vld [vmem:[%s4863_s2 + $0x1] ss:$0 sm:$0xff] }
  0x68   : > { %1194 = vmatpush.bf16.msrb.mxu3 %v3957_v61  ;;  %v3990_v61 = vld [vmem:[#allocation2 + $0x2c8] sm:$0xff] }
  0x6a   : > { %1202 = vmatpush.bf16.msra.mxu0 %v3971_v4 }
  0x6e   : > { %1203 = vmatpush.bf16.msra.mxu0 %v3970_v6 }
  0x72   : > { %1204 = vmatpush.bf16.msra.mxu0 %v3969_v35 }
  0x76   : > { %1205 = vmatpush.bf16.msra.mxu0 %v3968_v38  ;;  %v3985_v38 = vld [vmem:[#allocation2 + $0x2a0] sm:$0xff] }
  0x7a   : > { %1206 = vmatpush.bf16.msra.mxu0 %v3967_v46 }
  0x7e   : > { %1207 = vmatpush.bf16.msra.mxu0 %v3966_v49 }
  0x82   : > { %1208 = vmatpush.bf16.msra.mxu0 %v3965_v52  ;;  %v3975_v52 = vld [vmem:[#allocation2 + $0x250] sm:$0xff] }
  0xc2   : > { %v666_v7 = vpop.f32.mrf.mxu0 }
  0xc3   : > { %v667_v8 = vadd.f32 %v4195_v5, %v666_v7  ;;  %v680_v9 = vpop.f32.mrf.mxu1  ;;  %v4021_v7 = vld [vmem:[#allocation5 + $0xc0] sm:$0xff] }
  0xc5   : > { %v681_v10 = vadd.f32 %v680_v9, %v667_v8 }
  0xca   : > { %v694_v11 = vpop.f32.mrf.mxu2  ;;  %v668_v12 = vpop.f32.mrf.mxu0 }
  0xcb   : > { %v669_v13 = vadd.f32 %v4195_v5, %v668_v12  ;;  %v695_v14 = vadd.f32 %v694_v11, %v681_v10  ;;  %v682_v15 = vpop.f32.mrf.mxu1  ;;  %v3980_v12 = vld [vmem:[#allocation2 + $0x278] sm:$0xff] }
  0xcc   : > { %1430 = vmatpush.bf16.msra.mxu1 %v3980_v12  ;;  %v4030_v12 = vld [vmem:[#allocation5 + $0x108] sm:$0xff] }
  0xcd   : > { %v683_v16 = vadd.f32 %v682_v15, %v669_v13  ;;  %v699_v17 = vmax.f32 %v695_v14, 0.0  ;;  %v3988_v14 = vld [vmem:[#allocation2 + $0x2b8] sm:$0xff] }
  0xce   : > { %v3996_v15 = vld [vmem:[#allocation2 + $0x2f8] sm:$0xff]  ;;  %1444 = vmatpush.bf16.msra.mxu2 %v3988_v14  ;;  %v4011_v14 = vld [vmem:[#allocation5 + $0x70] sm:$0xff] }
  0xcf   : > { %v701_v24 = vrot.slane %v699_v17, 7  ;;  %v707_v25 = vrot.slane %v699_v17, 1 }
  0xd2   : > { %v696_v18 = vpop.f32.mrf.mxu2 }
  0xd3   : > { %v697_v19 = vadd.f32 %v696_v18, %v683_v16  ;;  %v3979_v18 = vld [vmem:[#allocation2 + $0x270] sm:$0xff] }
  0xd4   : > { %1431 = vmatpush.bf16.msra.mxu1 %v3979_v18  ;;  %v4010_v18 = vld [vmem:[#allocation5 + $0x68] sm:$0xff] }
  0xd5   : > { %v700_v20 = vmax.f32 %v697_v19, 0.0 }
  0xd7   : > { %v702_v26 = vrot.slane %v700_v20, 7  ;;  %v708_v27 = vrot.slane %v700_v20, 1  ;;  %v714_v28 = vpack.c.bf16 %v700_v20, %v699_v17  ;;  %v3987_v20 = vld [vmem:[#allocation2 + $0x2b0] sm:$0xff] }
  0xd8   : > { %1445 = vmatpush.bf16.msra.mxu2 %v3987_v20  ;;  %v3999_v20 = vld [vmem:[#allocation5 + $0x10] sm:$0xff] }
  0xd9   : > { %936 = vmatmul.bf16.vlgmr.msrb.gmra.mxu0 %v714_v28  ;;  %v703_v29 = vsel %vm446_vm0, %v701_v24, %v702_v26  ;;  %v704_v30 = vsel %vm446_vm0, %v702_v26, %v701_v24  ;;  %v709_v31 = vsel %vm453_vm1, %v707_v25, %v708_v27  ;;  %v710_v32 = vsel %vm453_vm1, %v708_v27, %v707_v25  ;;  %v3995_v24 = vld [vmem:[#allocation2 + $0x2f0] sm:$0xff]  ;;  %v3978_v28 = vld [vmem:[#allocation2 + $0x268] sm:$0xff] }
  0xda   : > { %v3166_v33 = vpack.c.bf16 %v703_v29, %v704_v30  ;;  %v3169_v34 = vpack.c.bf16 %v710_v32, %v709_v31  ;;  %1717 = vmatpush.bf16.msrb.mxu0 %v4028_v54  ;;  %v3986_v30 = vld [vmem:[#allocation2 + $0x2a8] sm:$0xff]  ;;  %1432 = vmatpush.bf16.msra.mxu1 %v3978_v28  ;;  %v3973_v54 = vld [vmem:[#allocation2 + $0x240] sm:$0xff]  ;;  %v4008_v28 = vld [vmem:[#allocation5 + $0x58] sm:$0xff] }
  0xdb   : > { %v3994_v31 = vld [vmem:[#allocation2 + $0x2e8] sm:$0xff] }
  0xdc   : > { %3167 = vmatmul.msk.bf16.vlgmr.msra.gmra.mxu3 %vm4577_vm5, %v3166_v33  ;;  %3170 = vmatmul.msk.bf16.vlgmr.msrb.gmra.mxu1 %vm4583_vm6, %v3169_v34  ;;  %v3977_v34 = vld [vmem:[#allocation2 + $0x260] sm:$0xff] }
  0xdd   : > { %1458 = vmatpush.bf16.msra.mxu3 %v3996_v15  ;;  %1446 = vmatpush.bf16.msra.mxu2 %v3986_v30  ;;  %v4040_v15 = vld [vmem:[#allocation5 + $0x158] sm:$0xff]  ;;  %v4037_v30 = vld [vmem:[#allocation5 + $0x140] sm:$0xff] }
  0xde   : > { %1718 = vmatpush.bf16.msrb.mxu0 %v4027_v57  ;;  %1433 = vmatpush.bf16.msra.mxu1 %v3977_v34  ;;  %v3983_v57 = vld [vmem:[#allocation2 + $0x290] sm:$0xff] }
  0xe1   : > { %1459 = vmatpush.bf16.msra.mxu3 %v3995_v24  ;;  %1447 = vmatpush.bf16.msra.mxu2 %v3985_v38  ;;  %v4009_v24 = vld [vmem:[#allocation5 + $0x60] sm:$0xff] }
  0xe2   : > { %1719 = vmatpush.bf16.msrb.mxu0 %v4026_v60  ;;  %1434 = vmatpush.bf16.msra.mxu1 %v3976_v50  ;;  %v3982_v60 = vld [vmem:[#allocation2 + $0x288] sm:$0xff] }
  0xe5   : > { %1460 = vmatpush.bf16.msra.mxu3 %v3994_v31  ;;  %1448 = vmatpush.bf16.msra.mxu2 %v3984_v51 }
  0xe6   : > { %1720 = vmatpush.bf16.msrb.mxu0 %v4025_v63  ;;  %1435 = vmatpush.bf16.msra.mxu1 %v3975_v52  ;;  %v3981_v63 = vld [vmem:[#allocation2 + $0x280] sm:$0xff] }
  0xe9   : > { %1461 = vmatpush.bf16.msra.mxu3 %v3993_v39  ;;  %1449 = vmatpush.bf16.msra.mxu2 %v3983_v57  ;;  %v4006_v39 = vld [vmem:[#allocation5 + $0x48] sm:$0xff] }
  0xea   : > { %1721 = vmatpush.bf16.msrb.mxu0 %v4024_v0  ;;  %1436 = vmatpush.bf16.msra.mxu1 %v3974_v53  ;;  %v4044_v0 = vld [vmem:[#allocation5 + $0x178] sm:$0xff] }
  0xed   : > { %1462 = vmatpush.bf16.msra.mxu3 %v3992_v55  ;;  %1450 = vmatpush.bf16.msra.mxu2 %v3982_v60 }
  0xee   : > { %1722 = vmatpush.bf16.msrb.mxu0 %v4023_v1  ;;  %1437 = vmatpush.bf16.msra.mxu1 %v3973_v54  ;;  %v3989_v1 = vld [vmem:[#allocation2 + $0x2c0] sm:$0xff] }
  0xf1   : > { %1463 = vmatpush.bf16.msra.mxu3 %v3991_v58  ;;  %1451 = vmatpush.bf16.msra.mxu2 %v3981_v63 }
  0xf2   : > { %1723 = vmatpush.bf16.msrb.mxu0 %v4022_v3  ;;  %1731 = vmatpush.bf16.msrb.mxu1 %v4036_v56  ;;  %v4004_v3 = vld [vmem:[#allocation5 + $0x38] sm:$0xff] }
  0xf5   : > { %1464 = vmatpush.bf16.msra.mxu3 %v3990_v61 }
  0xf6   : > { %1724 = vmatpush.bf16.msrb.mxu0 %v4021_v7  ;;  %1732 = vmatpush.bf16.msrb.mxu1 %v4035_v59  ;;  %v4042_v7 = vld [vmem:[#allocation5 + $0x168] sm:$0xff] }
  0xf9   : > { %1465 = vmatpush.bf16.msra.mxu3 %v3989_v1 }
  0xfa   : > { %1733 = vmatpush.bf16.msrb.mxu1 %v4034_v62 }
 0x156   : > { %v937_v4 = vpop.f32.mrf.mxu0 }
 0x159   : > { %v951_v8 = vpop.f32.mrf.mxu1 }
 0x15e   : > { %v939_v16 = vpop.f32.mrf.mxu0 }
 0x15f   : > { %v923_v5 = vpop.f32.mrf.mxu3 }
 0x160   : > { %v924_v6 = vadd.f32 %v4196_v2, %v923_v5  ;;  %v4032_v5 = vld [vmem:[#allocation5 + $0x118] sm:$0xff] }
 0x161   : > { %v953_v25 = vpop.f32.mrf.mxu1 }
 0x162   : > { %v938_v9 = vadd.f32 %v937_v4, %v924_v6  ;;  %v4043_v4 = vld [vmem:[#allocation5 + $0x170] sm:$0xff] }
 0x163   : > { %v4003_v6 = vld [vmem:[#allocation5 + $0x30] sm:$0xff] }
 0x164   : > { %v952_v10 = vadd.f32 %v951_v8, %v938_v9  ;;  %v4031_v8 = vld [vmem:[#allocation5 + $0x110] sm:$0xff]  ;;  %v4002_v9 = vld [vmem:[#allocation5 + $0x28] sm:$0xff] }
 0x166   : > { %v956_v17 = vmax.f32 %v952_v10, 0.0  ;;  %v4012_v10 = vld [vmem:[#allocation5 + $0x78] sm:$0xff] }
 0x167   : > { %v925_v11 = vpop.f32.mrf.mxu3 }
 0x168   : > { %v926_v13 = vadd.f32 %v4196_v2, %v925_v11  ;;  %v4613_v27 = vadd.f32 %v956_v17, %v4550_v22  ;;  %v4033_v2 = vld [vmem:[#allocation5 + $0x120] sm:$0xff]  ;;  %v4000_v17 = vld [vmem:[#allocation5 + $0x18] sm:$0xff] }
 0x169   : > { %1734 = vmatpush.bf16.msrb.mxu1 %v4033_v2  ;;  %v4041_v11 = vld [vmem:[#allocation5 + $0x160] sm:$0xff]  ;;  %v4060_v2 = vld [vmem:[#allocation5 + $0x1f8] sm:$0xff] }
 0x16a   : > { %v940_v19 = vadd.f32 %v939_v16, %v926_v13  ;;  %v966_v33 = vrot.slane %v4613_v27, 1  ;;  %v960_v36 = vrot.slane %v4613_v27, 7  ;;  %v4001_v13 = vld [vmem:[#allocation5 + $0x20] sm:$0xff] }
 0x16b   : > { %v4029_v16 = vld [vmem:[#allocation5 + $0x100] sm:$0xff] }
 0x16c   : > { %v954_v26 = vadd.f32 %v953_v25, %v940_v19  ;;  %v4039_v19 = vld [vmem:[#allocation5 + $0x150] sm:$0xff]  ;;  %v4038_v25 = vld [vmem:[#allocation5 + $0x148] sm:$0xff] }
 0x16d   : > { %1735 = vmatpush.bf16.msrb.mxu1 %v4032_v5  ;;  %v4019_v5 = vld [vmem:[#allocation5 + $0xb0] sm:$0xff] }
 0x16e   : > { %v957_v29 = vmax.f32 %v954_v26, 0.0  ;;  %v3998_v26 = vld [vmem:[#allocation5 + $0x8] sm:$0xff] }
 0x170   : > { %v4616_v32 = vadd.f32 %v957_v29, %v4553_v23  ;;  %v4197_v29 = vld [vmem:[%s4863_s2 + $0x2] ss:$0 sm:$0xff] }
 0x171   : > { %1736 = vmatpush.bf16.msrb.mxu1 %v4031_v8  ;;  %v4067_v8 = vld [vmem:[#allocation5 + $0x230] sm:$0xff] }
 0x172   : > { %v967_v35 = vrot.slane %v4616_v32, 1  ;;  %v4622_v22 = vpack.c.bf16 %v4616_v32, %v4613_v27  ;;  %v961_v37 = vrot.slane %v4616_v32, 7 }
 0x174   : > { %1195 = vmatmul.bf16.vlgmr.msrb.gmra.mxu3 %v4622_v22  ;;  %v962_v23 = vsel %vm446_vm0, %v960_v36, %v961_v37  ;;  %v963_v40 = vsel %vm446_vm0, %v961_v37, %v960_v36  ;;  %v968_v46 = vsel %vm453_vm1, %v966_v33, %v967_v35  ;;  %v969_v47 = vsel %vm453_vm1, %v967_v35, %v966_v33  ;;  %v3997_v35 = vld [vmem:[#allocation5] sm:$0xff]  ;;  %v4007_v36 = vld [vmem:[#allocation5 + $0x50] sm:$0xff] }
 0x175   : > { %v3269_v48 = vpack.c.bf16 %v962_v23, %v963_v40  ;;  %v4635_v49 = vpack.c.bf16 %v969_v47, %v968_v46  ;;  %1903 = vmatpush.bf16.msrb.mxu3 %v4004_v3  ;;  %1737 = vmatpush.bf16.msrb.mxu1 %v4030_v12  ;;  %v4005_v23 = vld [vmem:[#allocation5 + $0x40] sm:$0xff]  ;;  %v4052_v3 = vld [vmem:[#allocation5 + $0x1b8] sm:$0xff]  ;;  %v4015_v12 = vld [vmem:[#allocation5 + $0x90] sm:$0xff] }
 0x177   : > { %3270 = vmatmul.msk.bf16.vlgmr.msrb.gmra.mxu2 %vm4577_vm5, %v3269_v48  ;;  %3273 = vmatmul.msk.bf16.vlgmr.msra.gmra.mxu0 %vm4583_vm6, %v4635_v49 }
 0x178   : > { %1745 = vmatpush.bf16.msrb.mxu2 %v4044_v0  ;;  %1917 = vmatpush.bf16.msra.mxu0 %v4012_v10  ;;  %v4017_v10 = vld [vmem:[#allocation5 + $0xa0] sm:$0xff] }
 0x179   : > { %1904 = vmatpush.bf16.msrb.mxu3 %v4003_v6  ;;  %1738 = vmatpush.bf16.msrb.mxu1 %v4029_v16  ;;  %v4059_v6 = vld [vmem:[#allocation5 + $0x1f0] sm:$0xff]  ;;  %v4066_v16 = vld [vmem:[#allocation5 + $0x228] sm:$0xff] }
 0x17c   : > { %1746 = vmatpush.bf16.msrb.mxu2 %v4043_v4  ;;  %1918 = vmatpush.bf16.msra.mxu0 %v4011_v14  ;;  %v4068_v4 = vld [vmem:[#allocation5 + $0x238] sm:$0xff]  ;;  %v4013_v14 = vld [vmem:[#allocation5 + $0x80] sm:$0xff] }
 0x17d   : > { %1905 = vmatpush.bf16.msrb.mxu3 %v4002_v9  ;;  %v4018_v9 = vld [vmem:[#allocation5 + $0xa8] sm:$0xff] }
 0x180   : > { %1747 = vmatpush.bf16.msrb.mxu2 %v4042_v7  ;;  %1919 = vmatpush.bf16.msra.mxu0 %v4010_v18  ;;  %v4051_v7 = vld [vmem:[#allocation5 + $0x1b0] sm:$0xff]  ;;  %v4056_v18 = vld [vmem:[#allocation5 + $0x1d8] sm:$0xff] }
 0x181   : > { %1906 = vmatpush.bf16.msrb.mxu3 %v4001_v13  ;;  %v4014_v13 = vld [vmem:[#allocation5 + $0x88] sm:$0xff] }
 0x184   : > { %1748 = vmatpush.bf16.msrb.mxu2 %v4041_v11  ;;  %1920 = vmatpush.bf16.msra.mxu0 %v4009_v24  ;;  %v4016_v11 = vld [vmem:[#allocation5 + $0x98] sm:$0xff]  ;;  %v4055_v24 = vld [vmem:[#allocation5 + $0x1d0] sm:$0xff] }
 0x185   : > { %1907 = vmatpush.bf16.msrb.mxu3 %v4000_v17  ;;  %v4065_v17 = vld [vmem:[#allocation5 + $0x220] sm:$0xff] }
 0x187   : > { %3475 = vmatmul.msk.bf16.vlgmr.msrb.gmra.mxu0 %vm4577_vm5, %v3269_v48 }
 0x188   : > { %1749 = vmatpush.bf16.msrb.mxu2 %v4040_v15  ;;  %1921 = vmatpush.bf16.msra.mxu0 %v4008_v28  ;;  %v4050_v15 = vld [vmem:[#allocation5 + $0x1a8] sm:$0xff] }
 0x189   : > { %1908 = vmatpush.bf16.msrb.mxu3 %v3999_v20  ;;  %v4064_v20 = vld [vmem:[#allocation5 + $0x218] sm:$0xff]  ;;  %v4046_v28 = vld [vmem:[#allocation5 + $0x188] sm:$0xff] }
 0x18c   : > { %1750 = vmatpush.bf16.msrb.mxu2 %v4039_v19  ;;  %1922 = vmatpush.bf16.msra.mxu0 %v4007_v36  ;;  %v4048_v19 = vld [vmem:[#allocation5 + $0x198] sm:$0xff] }
 0x18d   : > { %1909 = vmatpush.bf16.msrb.mxu3 %v3998_v26  ;;  %v4054_v26 = vld [vmem:[#allocation5 + $0x1c8] sm:$0xff] }
 0x190   : > { %1751 = vmatpush.bf16.msrb.mxu2 %v4038_v25  ;;  %1923 = vmatpush.bf16.msra.mxu0 %v4006_v39  ;;  %v4063_v25 = vld [vmem:[#allocation5 + $0x210] sm:$0xff] }
 0x191   : > { %1910 = vmatpush.bf16.msrb.mxu3 %v3997_v35 }
 0x194   : > { %1752 = vmatpush.bf16.msrb.mxu2 %v4037_v30  ;;  %1924 = vmatpush.bf16.msra.mxu0 %v4005_v23  ;;  %v4053_v30 = vld [vmem:[#allocation5 + $0x1c0] sm:$0xff] }
 0x197   : > { %1925 = vmatmul.bf16.vlgmr.msra.gmra.mxu0 %v4575_v42  ;;  %v4020_v42 = vld [vmem:[#allocation5 + $0xb8] sm:$0xff] }
 0x198   : > { %2181 = vmatpush.bf16.msrb.mxu0 %v4068_v4 }
 0x19c   : > { %2182 = vmatpush.bf16.msrb.mxu0 %v4067_v8  ;;  %v2220_v8 = vld [vmem:[%s4866_s5 + $0x50] sm:$0xff] }
 0x1a0   : > { %2183 = vmatpush.bf16.msrb.mxu0 %v4066_v16  ;;  %v2215_v16 = vld [vmem:[%s4866_s5 + $0x28] sm:$0xff] }
 0x1a4   : > { %2184 = vmatpush.bf16.msrb.mxu0 %v4065_v17  ;;  %v2213_v17 = vld [vmem:[%s4866_s5 + $0x18] sm:$0xff] }
 0x1a8   : > { %2185 = vmatpush.bf16.msrb.mxu0 %v4064_v20  ;;  %v2212_v20 = vld [vmem:[%s4866_s5 + $0x10] sm:$0xff] }
 0x1ac   : > { %2186 = vmatpush.bf16.msrb.mxu0 %v4063_v25  ;;  %v2210_v25 = vld [vmem:[%s4866_s5] sm:$0xff] }
 0x1f4   : > { %v1210_v37 = vpop.f32.mrf.mxu0 }
 0x1f7   : > { %v1196_v31 = vpop.f32.mrf.mxu3 }
 0x1fa   : > { %v1182_v33 = vpop.f32.mrf.mxu2 }
 0x1fb   : > { %v1183_v34 = vadd.f32 %v4197_v29, %v1182_v33  ;;  %v4061_v33 = vld [vmem:[#allocation5 + $0x200] sm:$0xff] }
 0x1fc   : > { %v1212_v52 = vpop.f32.mrf.mxu0 }
 0x1fd   : > { %v1197_v38 = vadd.f32 %v1196_v31, %v1183_v34  ;;  %v4045_v31 = vld [vmem:[#allocation5 + $0x180] sm:$0xff] }
 0x1fe   : > { %v4198_v34 = vld [vmem:[%s4863_s2 + $0x3] ss:$0 sm:$0xff] }
 0x1ff   : > { %v1211_v40 = vadd.f32 %v1210_v37, %v1197_v38  ;;  %v1198_v48 = vpop.f32.mrf.mxu3 }
 0x201   : > { %v1215_v51 = vmax.f32 %v1211_v40, 0.0 }
 0x202   : > { %v1184_v46 = vpop.f32.mrf.mxu2 }
 0x203   : > { %v1185_v47 = vadd.f32 %v4197_v29, %v1184_v46  ;;  %v1217_v55 = vrot.slane %v1215_v51, 7  ;;  %v1223_v56 = vrot.slane %v1215_v51, 1  ;;  %v4062_v29 = vld [vmem:[#allocation5 + $0x208] sm:$0xff] }
 0x204   : > { %2187 = vmatpush.bf16.msrb.mxu0 %v4062_v29 }
 0x205   : > { %v1199_v50 = vadd.f32 %v1198_v48, %v1185_v47 }
 0x207   : > { %v1213_v53 = vadd.f32 %v1212_v52, %v1199_v50 }
 0x208   : > { %2188 = vmatpush.bf16.msrb.mxu0 %v4061_v33 }
 0x209   : > { %v1216_v54 = vmax.f32 %v1213_v53, 0.0 }
 0x20b   : > { %v1218_v57 = vrot.slane %v1216_v54, 7  ;;  %v1224_v58 = vrot.slane %v1216_v54, 1  ;;  %v1230_v59 = vpack.c.bf16 %v1216_v54, %v1215_v51 }
 0x20d   : > { %1452 = vmatmul.bf16.vlgmr.msra.gmra.mxu2 %v1230_v59  ;;  %v1219_v60 = vsel %vm446_vm0, %v1217_v55, %v1218_v57  ;;  %v1220_v61 = vsel %vm446_vm0, %v1218_v57, %v1217_v55  ;;  %v1225_v62 = vsel %vm453_vm1, %v1223_v56, %v1224_v58  ;;  %v1226_v63 = vsel %vm453_vm1, %v1224_v58, %v1223_v56 }
 0x20e   : > { %v3372_v0 = vpack.c.bf16 %v1219_v60, %v1220_v61  ;;  %v3375_v1 = vpack.c.bf16 %v1226_v63, %v1225_v62  ;;  %2153 = vmatpush.bf16.msra.mxu2 %v4052_v3  ;;  %v2223_v3 = vld [vmem:[%s4866_s5 + $0x68] sm:$0xff] }
 0x210   : > { %3373 = vmatmul.msk.bf16.vlgmr.msra.gmra.mxu1 %vm4577_vm5, %v3372_v0  ;;  %3376 = vmatmul.msk.bf16.vlgmr.msra.gmra.mxu3 %vm4583_vm6, %v3375_v1  ;;  %v1726_v0 = vpop.f32.mrf.mxu0  ;;  %v2225_v1 = vld [vmem:[%s4866_s5 + $0x78] sm:$0xff] }
 0x211   : > { %1931 = vmatpush.bf16.msra.mxu1 %v4020_v42  ;;  %2167 = vmatpush.bf16.msra.mxu3 %v4060_v2  ;;  %v2224_v2 = vld [vmem:[%s4866_s5 + $0x70] sm:$0xff] }
 0x212   : > { %2154 = vmatpush.bf16.msra.mxu2 %v4051_v7 }
 0x215   : > { %1932 = vmatpush.bf16.msra.mxu1 %v4019_v5  ;;  %2168 = vmatpush.bf16.msra.mxu3 %v4059_v6  ;;  %v2222_v5 = vld [vmem:[%s4866_s5 + $0x60] sm:$0xff]  ;;  %v2221_v6 = vld [vmem:[%s4866_s5 + $0x58] sm:$0xff] }
 0x216   : > { %2155 = vmatpush.bf16.msra.mxu2 %v4050_v15 }
 0x218   : > { %v1728_v4 = vpop.f32.mrf.mxu0 }
 0x219   : > { %1933 = vmatpush.bf16.msra.mxu1 %v4018_v9 }
 0x21d   : > { %3478 = vmatmul.msk.bf16.vlgmr.msrb.gmra.mxu2 %vm4583_vm6, %v4635_v49  ;;  %1934 = vmatpush.bf16.msra.mxu1 %v4017_v10  ;;  %v4058_v49 = vld [vmem:[#allocation5 + $0x1e8] sm:$0xff] }
 0x21e   : > { %2169 = vmatpush.bf16.msra.mxu3 %v4058_v49  ;;  %v2219_v10 = vld [vmem:[%s4866_s5 + $0x48] sm:$0xff]  ;;  %v2216_v49 = vld [vmem:[%s4866_s5 + $0x30] sm:$0xff] }
 0x220   : > { %1739 = vmatmul.bf16.vlgmr.msrb.gmra.mxu1 %v4622_v22  ;;  %3577 = vmatmul.msk.bf16.vlgmr.msrb.gmra.mxu3 %vm4577_vm5, %v4571_v41  ;;  %v4057_v22 = vld [vmem:[#allocation5 + $0x1e0] sm:$0xff] }
 0x221   : > { %1935 = vmatpush.bf16.msra.mxu1 %v4016_v11  ;;  %v4049_v41 = vld [vmem:[#allocation5 + $0x1a0] sm:$0xff] }
 0x222   : > { %2170 = vmatpush.bf16.msra.mxu3 %v4057_v22  ;;  %2156 = vmatpush.bf16.msra.mxu2 %v4049_v41  ;;  %v2214_v22 = vld [vmem:[%s4866_s5 + $0x20] sm:$0xff] }
 0x225   : > { %1936 = vmatpush.bf16.msra.mxu1 %v4015_v12  ;;  %v1926_v12 = vpop.f32.mrf.mxu0 }
 0x226   : > { %2171 = vmatpush.bf16.msra.mxu3 %v4056_v18  ;;  %2157 = vmatpush.bf16.msra.mxu2 %v4048_v19 }
 0x229   : > { %1937 = vmatpush.bf16.msra.mxu1 %v4014_v13  ;;  %v2218_v13 = vld [vmem:[%s4866_s5 + $0x40] sm:$0xff] }
 0x22a   : > { %2172 = vmatpush.bf16.msra.mxu3 %v4055_v24  ;;  %v2211_v24 = vld [vmem:[%s4866_s5 + $0x8] sm:$0xff] }
 0x22d   : > { %1938 = vmatpush.bf16.msra.mxu1 %v4013_v14  ;;  %v2217_v14 = vld [vmem:[%s4866_s5 + $0x38] sm:$0xff]  ;;  %v1928_v19 = vpop.f32.mrf.mxu0 }
 0x22e   : > { %2173 = vmatpush.bf16.msra.mxu3 %v4054_v26 }
 0x230   : > { %3580 = vmatmul.msk.bf16.vlgmr.msra.gmra.mxu1 %vm4583_vm6, %v4581_v44  ;;  %v4047_v44 = vld [vmem:[#allocation5 + $0x190] sm:$0xff] }
 0x231   : > { %2158 = vmatpush.bf16.msra.mxu2 %v4047_v44  ;;  %2226 = vmatpush.msrb.mxu1 %v2225_v1  ;;  %v4100_v1 = vld [vmem:[#allocation7 + $0xf4] sm:$0xf0] }
 0x232   : > { %2174 = vmatpush.bf16.msra.mxu3 %v4053_v30 }
 0x233   : > { %2227 = vmatpush.msrb.mxu1 %v2224_v2  ;;  %v3744_v2 = vld [vmem:[#allocation7 + $0x70] sm:$0xf] }
 0x235   : > { %2159 = vmatpush.bf16.msra.mxu2 %v4046_v28  ;;  %2228 = vmatpush.msrb.mxu1 %v2223_v3 }
 0x237   : > { %2229 = vmatpush.msrb.mxu1 %v2222_v5  ;;  %v3800_v5 = vld [vmem:[#allocation7 + $0xe0] sm:$0xf] }
 0x239   : > { %2160 = vmatpush.bf16.msra.mxu2 %v4045_v31  ;;  %2230 = vmatpush.msrb.mxu1 %v2221_v6  ;;  %v2247_v31 = vld [vmem:[%s4867_s6] sm:$0x3]  ;;  %v4098_v6 = vld [vmem:[#allocation7 + $0xe4] sm:$0xf0] }
 0x23b   : > { %2231 = vmatpush.msrb.mxu1 %v2220_v8  ;;  %v3801_v8 = vor.u32 %v4098_v6, %v3800_v5  ;;  %v3848_v5 = vld [vmem:[#allocation7 + $0x140] sm:$0xf] }
 0x23d   : > { %2232 = vmatpush.msrb.mxu1 %v2219_v10  ;;  %3683 = vmatpush.msk.msrb.mxu2 %vm2252_vm7, %v2247_v31  ;;  %v4083_v31 = vld [vmem:[#allocation7 + $0x74] sm:$0xf] }
 0x23f   : > { %2233 = vmatpush.msrb.mxu1 %v2218_v13 }
 0x241   : > { %2234 = vmatpush.msrb.mxu1 %v2217_v14  ;;  %v3792_v14 = vld [vmem:[#allocation7 + $0xd0] sm:$0xf] }
 0x243   : > { %2235 = vmatpush.msrb.mxu1 %v2216_v49  ;;  %v4096_v49 = vld [vmem:[#allocation7 + $0xd4] sm:$0xf0] }
 0x245   : > { %2236 = vmatpush.msrb.mxu1 %v2215_v16  ;;  %v3728_v16 = vld [vmem:[#allocation7 + $0x50] sm:$0xf] }
 0x247   : > { %2237 = vmatpush.msrb.mxu1 %v2214_v22  ;;  %v4080_v22 = vld [vmem:[#allocation7 + $0x54] sm:$0xf0] }
 0x249   : > { %2238 = vmatpush.msrb.mxu1 %v2213_v17  ;;  %v3784_v17 = vld [vmem:[#allocation7 + $0xc0] sm:$0xf] }
 0x24b   : > { %2239 = vmatpush.msrb.mxu1 %v2212_v20  ;;  %v3720_v20 = vld [vmem:[#allocation7 + $0x40] sm:$0xf] }
 0x24d   : > { %2240 = vmatpush.msrb.mxu1 %v2211_v24  ;;  %v4078_v24 = vld [vmem:[#allocation7 + $0x44] sm:$0xf0] }
 0x24f   : > { %2241 = vmatpush.msrb.mxu1 %v2210_v25  ;;  %v3776_v25 = vld [vmem:[#allocation7 + $0xb0] sm:$0xf] }
 0x28d   : > { %v1439_v35 = vpop.f32.mrf.mxu1 }
 0x28e   : > { %v1440_v36 = vadd.f32 %v4198_v34, %v1439_v35 }
 0x290   : > { %v1453_v37 = vpop.f32.mrf.mxu2 }
 0x291   : > { %v1454_v38 = vadd.f32 %v1453_v37, %v1440_v36 }
 0x293   : > { %v1467_v39 = vpop.f32.mrf.mxu3 }
 0x294   : > { %v1468_v23 = vadd.f32 %v1467_v39, %v1454_v38 }
 0x295   : > { %v1441_v40 = vpop.f32.mrf.mxu1 }
 0x296   : > { %v1442_v46 = vadd.f32 %v4198_v34, %v1441_v40  ;;  %v1472_v48 = vmax.f32 %v1468_v23, 0.0 }
 0x298   : > { %v1455_v47 = vpop.f32.mrf.mxu2  ;;  %v1474_v53 = vadd.f32 %v1472_v48, %v4613_v27 }
 0x299   : > { %v1456_v50 = vadd.f32 %v1455_v47, %v1442_v46 }
 0x29a   : > { %v1945_v56 = vrot.slane %v1474_v53, 7  ;;  %v1951_v57 = vrot.slane %v1474_v53, 1 }
 0x29b   : > { %v1469_v51 = vpop.f32.mrf.mxu3 }
 0x29c   : > { %v1470_v52 = vadd.f32 %v1469_v51, %v1456_v50 }
 0x29d   : > { %v1740_v7 = vpop.f32.mrf.mxu1 }
 0x29e   : > { %v1473_v54 = vmax.f32 %v1470_v52, 0.0  ;;  %v1741_v44 = vadd.f32 %v1740_v7, %v1726_v0  ;;  %v3808_v0 = vld [vmem:[#allocation7 + $0xf0] sm:$0xf] }
 0x29f   : > { %v3809_v3 = vor.u32 %v4100_v1, %v3808_v0  ;;  %v3696_v0 = vld [vmem:[#allocation7 + $0x10] sm:$0xf]  ;;  %v4072_v1 = vld [vmem:[#allocation7 + $0x14] sm:$0xf0] }
 0x2a0   : > { %v1475_v55 = vadd.f32 %v1473_v54, %v4616_v32  ;;  %v1754_v11 = vpop.f32.mrf.mxu2 }
 0x2a1   : > { %v1755_v30 = vadd.f32 %v1754_v11, %v1741_v44  ;;  %v3736_v11 = vld [vmem:[#allocation7 + $0x60] sm:$0xf]  ;;  %v3721_v44 = vor.u32 %v4078_v24, %v3720_v20  ;;  %v4099_v20 = vld [vmem:[#allocation7 + $0xf4] sm:$0xf]  ;;  %v3810_v24 = vld [vmem:[#allocation7 + $0xf8] sm:$0xf0] }
 0x2a2   : > { %v1946_v58 = vrot.slane %v1475_v55, 7  ;;  %v1952_v59 = vrot.slane %v1475_v55, 1  ;;  %v1958_v60 = vpack.c.bf16 %v1475_v55, %v1474_v53  ;;  %v4199_v55 = vld [vmem:[%s4865_s4] ss:$0 sm:$0xff] }
 0x2a3   : > { %v1912_v9 = vpop.f32.mrf.mxu3 }
 0x2a4   : > { %v1947_v61 = vsel %vm446_vm0, %v1945_v56, %v1946_v58  ;;  %v1948_v62 = vsel %vm446_vm0, %v1946_v58, %v1945_v56  ;;  %v1953_v63 = vsel %vm453_vm1, %v1951_v57, %v1952_v59  ;;  %v1954_v27 = vsel %vm453_vm1, %v1952_v59, %v1951_v57  ;;  %2175 = vmatmul.bf16.vlgmr.msra.gmra.mxu3 %v1958_v60 }
 0x2a5   : > { %v3678_v42 = vpack.c.bf16 %v1947_v61, %v1948_v62  ;;  %v3681_v32 = vpack.c.bf16 %v1954_v27, %v1953_v63  ;;  %v1742_v15 = vpop.f32.mrf.mxu1  ;;  %v1913_v36 = vadd.f32 %v1912_v9, %v1755_v30  ;;  %v4116_v30 = vld [vmem:[#allocation7 + $0x174] sm:$0xf0] }
 0x2a6   : > { %v1743_v26 = vadd.f32 %v1742_v15, %v1728_v4  ;;  %v4084_v4 = vld [vmem:[#allocation7 + $0x74] sm:$0xf0]  ;;  %v3793_v15 = vor.u32 %v4096_v49, %v3792_v14  ;;  %v3688_v49 = vld [vmem:[#allocation7] sm:$0xf] }
 0x2a7   : > { %3679 = vmatmul.msk.bf16.vlgmr.msra.gmra.mxu2 %vm4577_vm5, %v3678_v42  ;;  %3682 = vmatmul.msk.bf16.vlgmr.msrb.gmra.mxu0 %vm4583_vm6, %v3681_v32  ;;  %v1927_v39 = vadd.f32 %v1926_v12, %v1913_v36  ;;  %v3745_v7 = vor.u32 %v4084_v4, %v3744_v2  ;;  %v4082_v12 = vld [vmem:[#allocation7 + $0x64] sm:$0xf0]  ;;  %v3712_v36 = vld [vmem:[#allocation7 + $0x30] sm:$0xf]  ;;  %v3697_v2 = vor.u32 %v4072_v1, %v3696_v0  ;;  %v3690_v1 = vld [vmem:[#allocation7 + $0x8] sm:$0xf0] }
 0x2a8   : > { %v1756_v18 = vpop.f32.mrf.mxu2  ;;  %2625 = vmatpush.bf16.msra.mxu2 %v3809_v3  ;;  %v3737_v13 = vor.u32 %v4082_v12, %v3736_v11  ;;  %v3752_v3 = vld [vmem:[#allocation7 + $0x80] sm:$0xf]  ;;  %v4086_v4 = vld [vmem:[#allocation7 + $0x84] sm:$0xf0]  ;;  %v4115_v12 = vld [vmem:[#allocation7 + $0x174] sm:$0xf] }
 0x2a9   : > { %v1757_v35 = vadd.f32 %v1756_v18, %v1743_v26  ;;  %2611 = vmatpush.bf16.msrb.mxu3 %v3745_v7  ;;  %v4094_v18 = vld [vmem:[#allocation7 + $0xc4] sm:$0xf0]  ;;  %v4092_v26 = vld [vmem:[#allocation7 + $0xb4] sm:$0xf0]  ;;  %v3753_v6 = vor.u32 %v4086_v4, %v3752_v3  ;;  %v3786_v3 = vld [vmem:[#allocation7 + $0xc8] sm:$0xf0] }
 0x2aa   : > { %v4110_v7 = vld [vmem:[#allocation7 + $0x144] sm:$0xf0] }
 0x2ab   : > { %v1914_v41 = vpop.f32.mrf.mxu3 }
 0x2ac   : > { %v1915_v38 = vadd.f32 %v1914_v41, %v1757_v35  ;;  %2626 = vmatpush.bf16.msra.mxu2 %v3801_v8  ;;  %v3729_v41 = vor.u32 %v4080_v22, %v3728_v16  ;;  %v4077_v8 = vld [vmem:[#allocation7 + $0x44] sm:$0xf]  ;;  %v3840_v22 = vld [vmem:[#allocation7 + $0x130] sm:$0xf] }
 0x2ad   : > { %v1940_v28 = vpop.f32.mrf.mxu1  ;;  %2612 = vmatpush.bf16.msrb.mxu3 %v3737_v13  ;;  %v3874_v13 = vld [vmem:[#allocation7 + $0x178] sm:$0xf0] }
 0x2ae   : > { %v1929_v48 = vadd.f32 %v1928_v19, %v1915_v38  ;;  %v1941_v50 = vadd.f32 %v1940_v28, %v1927_v39  ;;  %v3785_v19 = vor.u32 %v4094_v18, %v3784_v17  ;;  %v3872_v28 = vld [vmem:[#allocation7 + $0x170] sm:$0xf]  ;;  %v3768_v39 = vld [vmem:[#allocation7 + $0xa0] sm:$0xf]  ;;  %v3877_v14 = vor.u32 %v4115_v12, %v3874_v13  ;;  %v4075_v17 = vld [vmem:[#allocation7 + $0x34] sm:$0xf] }
 0x2b0   : > { %2627 = vmatpush.bf16.msra.mxu2 %v3793_v15  ;;  %v4070_v15 = vld [vmem:[#allocation7 + $0x4] sm:$0xf0] }
 0x2b1   : > { %2613 = vmatpush.bf16.msrb.mxu3 %v3729_v41  ;;  %v3689_v16 = vor.u32 %v4070_v15, %v3688_v49  ;;  %v4108_v41 = vld [vmem:[#allocation7 + $0x134] sm:$0xf0]  ;;  %v3834_v49 = vld [vmem:[#allocation7 + $0x128] sm:$0xf0] }
 0x2b2   : > { %v3841_v18 = vor.u32 %v4108_v41, %v3840_v22  ;;  %v3770_v22 = vld [vmem:[#allocation7 + $0xa8] sm:$0xf0]  ;;  %v4103_v41 = vld [vmem:[#allocation7 + $0x114] sm:$0xf] }
 0x2b4   : > { %2628 = vmatpush.bf16.msra.mxu2 %v3785_v19  ;;  %v3714_v19 = vld [vmem:[#allocation7 + $0x38] sm:$0xf0] }
 0x2b5   : > { %v1942_v23 = vpop.f32.mrf.mxu1  ;;  %2614 = vmatpush.bf16.msrb.mxu3 %v3721_v44  ;;  %v3717_v44 = vor.u32 %v4075_v17, %v3714_v19  ;;  %v3826_v17 = vld [vmem:[#allocation7 + $0x118] sm:$0xf0] }
 0x2b6   : > { %v1943_v53 = vadd.f32 %v1942_v23, %v1929_v48  ;;  %v4090_v23 = vld [vmem:[#allocation7 + $0xa4] sm:$0xf0]  ;;  %v4081_v48 = vld [vmem:[#allocation7 + $0x64] sm:$0xf]  ;;  %v3829_v19 = vor.u32 %v4103_v41, %v3826_v17 }
 0x324   : > { %v2190_v33 = vpop.f32.mrf.mxu0 }
 0x327   : > { %v2176_v29 = vpop.f32.mrf.mxu3 }
 0x32a   : > { %v2162_v34 = vpop.f32.mrf.mxu2 }
 0x32b   : > { %v2177_v37 = vadd.f32 %v2176_v29, %v2162_v34  ;;  %v3777_v29 = vor.u32 %v4092_v26, %v3776_v25  ;;  %v3873_v34 = vor.u32 %v4116_v30, %v3872_v28  ;;  %v3813_v25 = vor.u32 %v4099_v20, %v3810_v24  ;;  %v4113_v26 = vld [vmem:[#allocation7 + $0x164] sm:$0xf]  ;;  %v3866_v28 = vld [vmem:[#allocation7 + $0x168] sm:$0xf0]  ;;  %v4087_v20 = vld [vmem:[#allocation7 + $0x94] sm:$0xf] }
 0x32c   : > { %v2192_v52 = vpop.f32.mrf.mxu0  ;;  %v3869_v30 = vor.u32 %v4113_v26, %v3866_v28  ;;  %v3762_v24 = vld [vmem:[#allocation7 + $0x98] sm:$0xf0] }
 0x32d   : > { %v2191_v40 = vadd.f32 %v2190_v33, %v2177_v37  ;;  %v3746_v33 = vld [vmem:[#allocation7 + $0x78] sm:$0xf0]  ;;  %2629 = vmatpush.bf16.msra.mxu2 %v3777_v29  ;;  %v4076_v37 = vld [vmem:[#allocation7 + $0x34] sm:$0xf0]  ;;  %2639 = vmatpush.bf16.msra.mxu0 %v3873_v34  ;;  %v3832_v29 = vld [vmem:[#allocation7 + $0x120] sm:$0xf]  ;;  %v3765_v28 = vor.u32 %v4087_v20, %v3762_v24 }
 0x32e   : > { %v3749_v35 = vor.u32 %v4083_v31, %v3746_v33  ;;  %v3713_v38 = vor.u32 %v4076_v37, %v3712_v36  ;;  %v4106_v31 = vld [vmem:[#allocation7 + $0x124] sm:$0xf0]  ;;  %v4073_v33 = vld [vmem:[#allocation7 + $0x24] sm:$0xf]  ;;  %v3706_v34 = vld [vmem:[#allocation7 + $0x28] sm:$0xf0] }
 0x32f   : > { %v2178_v46 = vpop.f32.mrf.mxu3  ;;  %v2195_v54 = vadd.f32 %v2191_v40, %v1941_v50  ;;  %v3864_v40 = vld [vmem:[#allocation7 + $0x160] sm:$0xf]  ;;  %v3738_v50 = vld [vmem:[#allocation7 + $0x68] sm:$0xf0]  ;;  %v3709_v36 = vor.u32 %v4073_v33, %v3706_v34  ;;  %v4097_v37 = vld [vmem:[#allocation7 + $0xe4] sm:$0xf] }
 0x330   : > { %2653 = vmatpush.bf16.msra.mxu1 %v3749_v35  ;;  %2615 = vmatpush.bf16.msrb.mxu3 %v3713_v38  ;;  %v3833_v35 = vor.u32 %v4106_v31, %v3832_v29  ;;  %v3802_v38 = vld [vmem:[#allocation7 + $0xe8] sm:$0xf0]  ;;  %v4085_v31 = vld [vmem:[#allocation7 + $0x84] sm:$0xf] }
 0x331   : > { %v4742_v58 = vadd.f32 %v4199_v55, %v2195_v54  ;;  %v4074_v54 = vld [vmem:[#allocation7 + $0x24] sm:$0xf0]  ;;  %v3754_v33 = vld [vmem:[#allocation7 + $0x88] sm:$0xf0] }
 0x332   : > { %v2164_v47 = vpop.f32.mrf.mxu2 }
 0x333   : > { %v2179_v51 = vadd.f32 %v2178_v46, %v2164_v47  ;;  %v3769_v46 = vor.u32 %v4090_v23, %v3768_v39  ;;  %v4114_v47 = vld [vmem:[#allocation7 + $0x164] sm:$0xf0]  ;;  %v4111_v39 = vld [vmem:[#allocation7 + $0x154] sm:$0xf]  ;;  %v3805_v23 = vor.u32 %v4097_v37, %v3802_v38 }
 0x335   : > { %v2193_v56 = vadd.f32 %v2192_v52, %v2179_v51  ;;  %v3865_v51 = vor.u32 %v4114_v47, %v3864_v40  ;;  %v3741_v52 = vor.u32 %v4081_v48, %v3738_v50  ;;  %2630 = vmatpush.bf16.msra.mxu2 %v3769_v46  ;;  %v3858_v40 = vld [vmem:[#allocation7 + $0x158] sm:$0xf0]  ;;  %v3824_v46 = vld [vmem:[#allocation7 + $0x110] sm:$0xf]  ;;  %v4104_v47 = vld [vmem:[#allocation7 + $0x114] sm:$0xf0] }
 0x336   : > { %v3861_v48 = vor.u32 %v4111_v39, %v3858_v40  ;;  %v4071_v50 = vld [vmem:[#allocation7 + $0x14] sm:$0xf] }
 0x337   : > { %v2196_v57 = vadd.f32 %v2193_v56, %v1943_v53  ;;  %v3704_v53 = vld [vmem:[#allocation7 + $0x20] sm:$0xf]  ;;  %2640 = vmatpush.bf16.msra.mxu0 %v3865_v51  ;;  %2654 = vmatpush.bf16.msra.mxu1 %v3741_v52  ;;  %v3760_v56 = vld [vmem:[#allocation7 + $0x90] sm:$0xf]  ;;  %v3698_v51 = vld [vmem:[#allocation7 + $0x18] sm:$0xf0] }
 0x338   : > { %v4095_v52 = vld [vmem:[#allocation7 + $0xd4] sm:$0xf] }
 0x339   : > { %v4744_v59 = vadd.f32 %v4199_v55, %v2196_v57  ;;  %v3705_v55 = vor.u32 %v4074_v54, %v3704_v53  ;;  %v4088_v57 = vld [vmem:[#allocation7 + $0x94] sm:$0xf0]  ;;  %v3794_v54 = vld [vmem:[#allocation7 + $0xd8] sm:$0xf0] }
 0x33b   : > { %v2203_v60 = vadd.f32 %v4744_v59, %v4742_v58  ;;  %2616 = vmatpush.bf16.msrb.mxu3 %v3705_v55  ;;  %v4109_v55 = vld [vmem:[#allocation7 + $0x144] sm:$0xf] }
 0x33d   : > { %v2204_v61 = vrot.slane %v2203_v60, 4 }
 0x33f   : > { %v2205_v62 = vadd.f32 %v2204_v61, %v2203_v60  ;;  %v3856_v60 = vld [vmem:[#allocation7 + $0x150] sm:$0xf]  ;;  %v3761_v61 = vor.u32 %v4088_v57, %v3760_v56  ;;  %2617 = vmatpush.bf16.msrb.mxu3 %v3697_v2  ;;  %v3850_v56 = vld [vmem:[#allocation7 + $0x148] sm:$0xf0]  ;;  %v4093_v2 = vld [vmem:[#allocation7 + $0xc4] sm:$0xf] }
 0x341   : > { %v2206_v63 = vrot.slane %v2205_v62, 2  ;;  %2631 = vmatpush.bf16.msra.mxu2 %v3761_v61  ;;  %v3701_v61 = vor.u32 %v4071_v50, %v3698_v51 }
 0x343   : > { %v2207_v27 = vadd.f32 %v2206_v63, %v2205_v62  ;;  %v4112_v62 = vld [vmem:[#allocation7 + $0x154] sm:$0xf0]  ;;  %v4079_v63 = vld [vmem:[#allocation7 + $0x54] sm:$0xf]  ;;  %2618 = vmatpush.bf16.msrb.mxu3 %v3689_v16  ;;  %v4089_v16 = vld [vmem:[#allocation7 + $0xa4] sm:$0xf] }
 0x345   : > { %v2208_v42 = vrot.slane %v2207_v27, 1  ;;  %2632 = vmatpush.bf16.msra.mxu2 %v3753_v6  ;;  %v4107_v6 = vld [vmem:[#allocation7 + $0x134] sm:$0xf] }
 0x347   : > { %v2209_v32 = vadd.f32 %v2208_v42, %v2207_v27  ;;  %v3730_v27 = vld [vmem:[#allocation7 + $0x58] sm:$0xf0]  ;;  %v3857_v42 = vor.u32 %v4112_v62, %v3856_v60  ;;  %2667 = vmatpush.bf16.msra.mxu3 %v3813_v25  ;;  %v3825_v60 = vor.u32 %v4104_v47, %v3824_v46  ;;  %v3797_v62 = vor.u32 %v4095_v52, %v3794_v54  ;;  %v3818_v25 = vld [vmem:[#allocation7 + $0x108] sm:$0xf0] }
 0x349   : > { %2242 = vmatmul.f32.vlgmr.msrb.gmra.mxu1 %v2209_v32  ;;  %v3733_v32 = vor.u32 %v4079_v63, %v3730_v27  ;;  %2641 = vmatpush.bf16.msra.mxu0 %v3857_v42  ;;  %v3853_v63 = vor.u32 %v4109_v55, %v3850_v56  ;;  %v3816_v27 = vld [vmem:[#allocation7 + $0x100] sm:$0xf]  ;;  %v4102_v42 = vld [vmem:[#allocation7 + $0x104] sm:$0xf0] }
 0x34a   : > { %v3817_v0 = vor.u32 %v4102_v42, %v3816_v27  ;;  %v4221_v55 = vld [vmem:[%s4545_s26 + $0x8] sm:$0xff] }
 0x34b   : > { %2655 = vmatpush.bf16.msra.mxu1 %v3733_v32  ;;  %2668 = vmatpush.bf16.msra.mxu3 %v3805_v23  ;;  %v4069_v32 = vld [vmem:[#allocation7 + $0x4] sm:$0xf] }
 0x34c   : > { %v3693_v4 = vor.u32 %v4069_v32, %v3690_v1  ;;  %v2367_v1 = vperm.slane %v2365_v21, 0 }
 0x34f   : > { %2669 = vmatpush.bf16.msra.mxu3 %v3797_v62 }
 0x3c6   : > { %v2243_v9 = vpop.f32.mrf.mxu1 }
 0x3c7   : > { %v2246_v10 = vmax.f32 %v2243_v9, 0.0  ;;  %v3722_v9 = vld [vmem:[#allocation7 + $0x48] sm:$0xf0] }
 0x3c8   : > { %v3725_v11 = vor.u32 %v4077_v8, %v3722_v9 }
 0x3c9   : > { %3684 = vmatmul.msk.f32.vlgmr.msrb.gmra.mxu2 %vm2248_vm8, %v2246_v10  ;;  %v3849_v10 = vor.u32 %v4110_v7, %v3848_v5  ;;  %v3789_v5 = vor.u32 %v4093_v2, %v3786_v3  ;;  %v3842_v7 = vld [vmem:[#allocation7 + $0x138] sm:$0xf0] }
 0x3ca   : > { %2656 = vmatpush.bf16.msra.mxu1 %v3725_v11  ;;  %2681 = vmatpush.bf16.msrb.mxu2 %v3877_v14  ;;  %v3845_v8 = vor.u32 %v4107_v6, %v3842_v7  ;;  %v3778_v11 = vld [vmem:[#allocation7 + $0xb8] sm:$0xf0]  ;;  %v4105_v14 = vld [vmem:[#allocation7 + $0x124] sm:$0xf]  ;;  %v2763_v7 = vld [vmem:[%s4870_s9 + $0x68] sm:$0xff] }
 0x3cb   : > { %2642 = vmatpush.bf16.msra.mxu0 %v3849_v10  ;;  %v4091_v10 = vld [vmem:[#allocation7 + $0xb4] sm:$0xf]  ;;  %2670 = vmatpush.bf16.msra.mxu3 %v3789_v5  ;;  %v3837_v15 = vor.u32 %v4105_v14, %v3834_v49  ;;  %v2765_v2 = vld [vmem:[%s4870_s9 + $0x78] sm:$0xff] }
 0x3cc   : > { %v3781_v13 = vor.u32 %v4091_v10, %v3778_v11  ;;  %v2761_v11 = vld [vmem:[%s4870_s9 + $0x58] sm:$0xff]  ;;  %v2760_v14 = vld [vmem:[%s4870_s9 + $0x50] sm:$0xff] }
 0x3ce   : > { %2657 = vmatpush.bf16.msra.mxu1 %v3717_v44  ;;  %2682 = vmatpush.bf16.msrb.mxu2 %v3869_v30  ;;  %v4101_v44 = vld [vmem:[#allocation7 + $0x104] sm:$0xf] }
 0x3cf   : > { %2643 = vmatpush.bf16.msra.mxu0 %v3841_v18  ;;  %2671 = vmatpush.bf16.msra.mxu3 %v3781_v13  ;;  %v3773_v18 = vor.u32 %v4089_v16, %v3770_v22  ;;  %v3821_v29 = vor.u32 %v4101_v44, %v3818_v25  ;;  %v2759_v16 = vld [vmem:[%s4870_s9 + $0x48] sm:$0xff]  ;;  %v2756_v44 = vld [vmem:[%s4870_s9 + $0x30] sm:$0xff] }
 0x3d2   : > { %2658 = vmatpush.bf16.msra.mxu1 %v3709_v36  ;;  %2683 = vmatpush.bf16.msrb.mxu2 %v3861_v48  ;;  %v3757_v36 = vor.u32 %v4085_v31, %v3754_v33  ;;  %v2753_v33 = vld [vmem:[%s4870_s9 + $0x18] sm:$0xff] }
 0x3d3   : > { %2644 = vmatpush.bf16.msra.mxu0 %v3833_v35  ;;  %2672 = vmatpush.bf16.msra.mxu3 %v3773_v18  ;;  %v2758_v18 = vld [vmem:[%s4870_s9 + $0x40] sm:$0xff] }
 0x3d6   : > { %2659 = vmatpush.bf16.msra.mxu1 %v3701_v61  ;;  %2684 = vmatpush.bf16.msrb.mxu2 %v3853_v63 }
 0x3d7   : > { %2645 = vmatpush.bf16.msra.mxu0 %v3825_v60  ;;  %2673 = vmatpush.bf16.msra.mxu3 %v3765_v28  ;;  %v2755_v28 = vld [vmem:[%s4870_s9 + $0x28] sm:$0xff] }
 0x3da   : > { %2660 = vmatpush.bf16.msra.mxu1 %v3693_v4  ;;  %2685 = vmatpush.bf16.msrb.mxu2 %v3845_v8 }
 0x3db   : > { %2646 = vmatpush.bf16.msra.mxu0 %v3817_v0  ;;  %2674 = vmatpush.bf16.msra.mxu3 %v3757_v36 }
 0x3de   : > { %2686 = vmatpush.bf16.msrb.mxu2 %v3837_v15 }
 0x3df   : > { %2766 = vmatpush.msrb.mxu0 %v2765_v2 }
 0x3e1   : > { %2767 = vmatpush.msrb.mxu0 %v2764_v43 }
 0x3e2   : > { %2687 = vmatpush.bf16.msrb.mxu2 %v3829_v19  ;;  %v2757_v19 = vld [vmem:[%s4870_s9 + $0x38] sm:$0xff] }
 0x3e3   : > { %2768 = vmatpush.msrb.mxu0 %v2763_v7 }
 0x3e6   : > { %2688 = vmatpush.bf16.msrb.mxu2 %v3821_v29  ;;  %v2368_v29 = vperm.slane %v2365_v21, 1 }
 0x44c   : > { %v2273_v53 = vpop.f32.mrf.mxu2 }
 0x44d   : > { %v3685_v57 = vmul.f32 -1.442695, %v2273_v53  ;;  %v4220_v53 = vld [vmem:[%s4545_s26] sm:$0xff] }
 0x44f   : > { %4200 = vpow2.f32 %v3685_v57 }
 0x455   : > { %v4201_v9 = vpop.eup %4200 }
 0x456   : > { %v2279_v12 = vadd.f32 1.0, %v4201_v9  ;;  %v2762_v9 = vld [vmem:[%s4870_s9 + $0x60] sm:$0xff] }
 0x457   : > { %2769 = vmatpush.msrb.mxu0 %v2762_v9 }
 0x458   : > { %4202 = vrcp.f32 %v2279_v12  ;;  %v2291_v35 = vand.u32 2147483648, %v2279_v12  ;;  %v2289_v38 = vand.u32 2147483647, %v2279_v12  ;;  %vm2285_vm10 = vweird.f32 %v2279_v12 }
 0x459   : > { %2770 = vmatpush.msrb.mxu0 %v2761_v11 }
 0x45a   : > { %v2292_v23 = vor.u32 1.1754944e-38, %v2291_v35  ;;  %vm2290_vm12 = vcmp.eq.f32.partialorder %v2289_v38, 8.507059e+37 }
 0x45b   : > { %2771 = vmatpush.msrb.mxu0 %v2760_v14 }
 0x45d   : > { %2772 = vmatpush.msrb.mxu0 %v2759_v16 }
 0x45e   : > { %v4203_v26 = vpop.eup %4202 }
 0x45f   : > { %v2281_v30 = vmul.f32 %v4203_v26, %v2279_v12  ;;  %vm2286_vm9 = vweird.f32 %v4203_v26  ;;  %2773 = vmatpush.msrb.mxu0 %v2758_v18 }
 0x460   : > { %vm2287_vm11 = vmor %vm2285_vm10, %vm2286_vm9 }
 0x461   : > { %v2282_v34 = vsub.f32 1.0, %v2281_v30  ;;  %2774 = vmatpush.msrb.mxu0 %v2757_v19  ;;  %v2754_v30 = vld [vmem:[%s4870_s9 + $0x20] sm:$0xff] }
 0x463   : > { %v2283_v37 = vmul.f32 %v4203_v26, %v2282_v34  ;;  %2775 = vmatpush.msrb.mxu0 %v2756_v44 }
 0x465   : > { %v2284_v39 = vadd.f32 %v4203_v26, %v2283_v37  ;;  %2776 = vmatpush.msrb.mxu0 %v2755_v28  ;;  %v2752_v37 = vld [vmem:[%s4870_s9 + $0x10] sm:$0xff] }
 0x467   : > { %v2288_v40 = vsel %vm2287_vm11, %v4203_v26, %v2284_v39  ;;  %2777 = vmatpush.msrb.mxu0 %v2754_v30 }
 0x468   : > { %v2293_v46 = vsel %vm2290_vm12, %v2292_v23, %v2288_v40 }
 0x469   : > { %v2295_v47 = vperm.slane %v2293_v46, 0  ;;  %2778 = vmatpush.msrb.mxu0 %v2753_v33 }
 0x46b   : > { %v2296_v48 = vmul.f32 %v2295_v47, %v4742_v58  ;;  %v2297_v50 = vmul.f32 %v2295_v47, %v4744_v59  ;;  %v2751_v47 = vld [vmem:[%s4870_s9 + $0x8] sm:$0xff]  ;;  %2779 = vmatpush.msrb.mxu0 %v2752_v37 }
 0x46d   : > { %v2298_v51 = vmax.f32 %v2296_v48, 0.0  ;;  %v2299_v52 = vmax.f32 %v2297_v50, 0.0  ;;  %2780 = vmatpush.msrb.mxu0 %v2751_v47 }
 0x46f   : > { %v2300_v54 = vadd.f32 %v4220_v53, %v2298_v51  ;;  %v2301_v56 = vadd.f32 %v4221_v55, %v2299_v52  ;;  %v2750_v51 = vld [vmem:[%s4870_s9] sm:$0xff] }
 0x470   : > { %2781 = vmatpush.msrb.mxu0 %v2750_v51 }
 0x471   : > { %v2302_v57 = vrot.slane %v2300_v54, 7  ;;  %v2303_v60 = vrot.slane %v2301_v56, 7  ;;  %v2308_v61 = vrot.slane %v2300_v54, 1  ;;  %v2309_v62 = vrot.slane %v2301_v56, 1 }
 0x472   : > { %v2315_v63 = vpack.c.bf16 %v2301_v56, %v2300_v54  ;;  %v2787_v56 = vld [vmem:[%s4871_s10] sm:$0x3] }
 0x473   : > { %v2304_v27 = vsel %vm446_vm0, %v2302_v57, %v2303_v60  ;;  %v2305_v42 = vsel %vm446_vm0, %v2303_v60, %v2302_v57  ;;  %v2310_v58 = vsel %vm453_vm1, %v2308_v61, %v2309_v62  ;;  %v2311_v59 = vsel %vm453_vm1, %v2309_v62, %v2308_v61  ;;  %3892 = vmatpush.msk.msrb.mxu1 %vm2252_vm7, %v2787_v56 }
 0x474   : > { %2633 = vmatmul.bf16.vlgmr.msra.gmra.mxu2 %v2315_v63  ;;  %v3879_v32 = vpack.c.bf16 %v2304_v27, %v2305_v42  ;;  %v3882_v0 = vpack.c.bf16 %v2311_v59, %v2310_v58 }
 0x476   : > { %3880 = vmatmul.msk.bf16.vlgmr.msrb.gmra.mxu3 %vm4577_vm5, %v3879_v32  ;;  %3883 = vmatmul.msk.bf16.vlgmr.msra.gmra.mxu0 %vm4583_vm6, %v3882_v0 }
 0x477   : > { %3886 = vmatmul.msk.bf16.vlgmr.msra.gmra.mxu1 %vm4577_vm5, %v3879_v32 }
 0x484   : > { %3889 = vmatmul.msk.bf16.vlgmr.msrb.gmra.mxu2 %vm4583_vm6, %v3882_v0 }
 0x486   : > { %2675 = vmatmul.bf16.vlgmr.msra.gmra.mxu3 %v2315_v63 }
 0x4f3   : > { %v2648_v45 = vpop.f32.mrf.mxu0 }
 0x4f4   : > { %v2662_v41 = vpop.f32.mrf.mxu1 }
 0x4f5   : > { %v2663_v34 = vadd.f32 %v2662_v41, %v2368_v29 }
 0x4f7   : > { %v2634_v3 = vpop.f32.mrf.mxu2 }
 0x4f9   : > { %v2620_v4 = vpop.f32.mrf.mxu3 }
 0x4fa   : > { %v2621_v5 = vadd.f32 %v2620_v4, %v2367_v1 }
 0x4fb   : > { %v2650_v22 = vpop.f32.mrf.mxu0 }
 0x4fc   : > { %v2635_v6 = vadd.f32 %v2634_v3, %v2621_v5  ;;  %v2664_v36 = vpop.f32.mrf.mxu1 }
 0x4fd   : > { %v2665_v48 = vadd.f32 %v2664_v36, %v2368_v29 }
 0x4fe   : > { %v2649_v8 = vadd.f32 %v2648_v45, %v2635_v6 }
 0x4ff   : > { %v2636_v49 = vpop.f32.mrf.mxu2 }
 0x500   : > { %v3890_v10 = vmul.f32 -1.442695, %v2649_v8 }
 0x501   : > { %v2622_v12 = vpop.f32.mrf.mxu3 }
 0x502   : > { %4204 = vpow2.f32 %v3890_v10  ;;  %v2623_v13 = vadd.f32 %v2622_v12, %v2367_v1 }
 0x504   : > { %v2637_v15 = vadd.f32 %v2636_v49, %v2623_v13 }
 0x506   : > { %v2651_v17 = vadd.f32 %v2650_v22, %v2637_v15 }
 0x507   : > { %v2690_v31 = vpop.f32.mrf.mxu2 }
 0x508   : > { %v4205_v20 = vpop.eup %4204  ;;  %v3891_v24 = vmul.f32 -1.442695, %v2651_v17 }
 0x509   : > { %v2701_v25 = vadd.f32 1.0, %v4205_v20  ;;  %v2676_v26 = vpop.f32.mrf.mxu3 }
 0x50a   : > { %4206 = vpow2.f32 %v3891_v24  ;;  %v2677_v23 = vadd.f32 %v2676_v26, %v2663_v34 }
 0x50b   : > { %4208 = vrcp.f32 %v2701_v25  ;;  %v2714_v55 = vand.u32 2147483648, %v2701_v25  ;;  %vm2708_vm14 = vweird.f32 %v2701_v25  ;;  %v2712_v60 = vand.u32 2147483647, %v2701_v25 }
 0x50c   : > { %v2691_v52 = vadd.f32 %v2690_v31, %v2677_v23 }
 0x50d   : > { %v2715_v58 = vor.u32 1.1754944e-38, %v2714_v55  ;;  %vm2713_vm0 = vcmp.eq.f32.partialorder %v2712_v60, 8.507059e+37 }
 0x50f   : > { %v2692_v61 = vpop.f32.mrf.mxu2 }
 0x510   : > { %v4207_v35 = vpop.eup %4206 }
 0x511   : > { %v4209_v38 = vpop.eup %4208  ;;  %v2702_v39 = vadd.f32 1.0, %v4207_v35  ;;  %v2678_v46 = vpop.f32.mrf.mxu3 }
 0x512   : > { %v2704_v40 = vmul.f32 %v4209_v38, %v2701_v25  ;;  %v2679_v53 = vadd.f32 %v2678_v46, %v2665_v48  ;;  %vm2709_vm13 = vweird.f32 %v4209_v38 }
 0x513   : > { %4210 = vrcp.f32 %v2702_v39  ;;  %vm2710_vm15 = vmor %vm2708_vm14, %vm2709_vm13  ;;  %v2729_v0 = vand.u32 2147483648, %v2702_v39  ;;  %v2727_v1 = vand.u32 2147483647, %v2702_v39  ;;  %vm2723_vm2 = vweird.f32 %v2702_v39 }
 0x514   : > { %v2705_v50 = vsub.f32 1.0, %v2704_v40  ;;  %4212 = vtanh.f32 %v2691_v52  ;;  %v2693_v63 = vadd.f32 %v2692_v61, %v2679_v53 }
 0x515   : > { %v2730_v5 = vor.u32 1.1754944e-38, %v2729_v0  ;;  %vm2728_vm4 = vcmp.eq.f32.partialorder %v2727_v1, 8.507059e+37 }
 0x516   : > { %v2706_v54 = vmul.f32 %v4209_v38, %v2705_v50  ;;  %4214 = vtanh.f32 %v2693_v63 }
 0x518   : > { %v2707_v57 = vadd.f32 %v4209_v38, %v2706_v54 }
 0x519   : > { %v4211_v62 = vpop.eup %4210 }
 0x51a   : > { %v2719_v27 = vmul.f32 %v4211_v62, %v2702_v39  ;;  %v2711_v42 = vsel %vm2710_vm15, %v4209_v38, %v2707_v57  ;;  %vm2724_vm1 = vweird.f32 %v4211_v62  ;;  %v4213_v2 = vpop.eup %4212 }
 0x51b   : > { %v2716_v32 = vsel %vm2713_vm0, %v2715_v58, %v2711_v42  ;;  %vm2725_vm3 = vmor %vm2723_vm2, %vm2724_vm1 }
 0x51c   : > { %v2720_v59 = vsub.f32 1.0, %v2719_v27  ;;  %v2735_v3 = vmul.f32 %v4213_v2, %v2716_v32  ;;  %v4215_v45 = vpop.eup %4214 }
 0x51e   : > { %v2721_v21 = vmul.f32 %v4211_v62, %v2720_v59  ;;  %v2739_v7 = vmul.f32 0.2, %v2735_v3  ;;  %vm2737_vm5 = vcmp.ge.f32.partialorder %v2735_v3, 0.0 }
 0x520   : > { %v2722_v4 = vadd.f32 %v4211_v62, %v2721_v21  ;;  %v2741_v10 = vsel %vm2737_vm5, %v2735_v3, %v2739_v7 }
 0x522   : > { %v2726_v43 = vsel %vm2725_vm3, %v4211_v62, %v2722_v4 }
 0x523   : > { %v2731_v6 = vsel %vm2728_vm4, %v2730_v5, %v2726_v43 }
 0x524   : > { %v2736_v8 = vmul.f32 %v4215_v45, %v2731_v6 }
 0x526   : > { %vm2738_vm6 = vcmp.ge.f32.partialorder %v2736_v8, 0.0  ;;  %v2740_v9 = vmul.f32 0.2, %v2736_v8 }
 0x528   : > { %v2742_v11 = vsel %vm2738_vm6, %v2736_v8, %v2740_v9 }
 0x529   : > { %v2743_v12 = vadd.f32 %v2742_v11, %v2741_v10 }
 0x52b   : > { %v2744_v13 = vrot.slane %v2743_v12, 4 }
 0x52d   : > { %v2745_v14 = vadd.f32 %v2744_v13, %v2743_v12 }
 0x52f   : > { %v2746_v49 = vrot.slane %v2745_v14, 2 }
 0x531   : > { %v2747_v15 = vadd.f32 %v2746_v49, %v2745_v14 }
 0x533   : > { %v2748_v16 = vrot.slane %v2747_v15, 1 }
 0x535   : > { %v2749_v22 = vadd.f32 %v2748_v16, %v2747_v15 }
 0x537   : > { %2782 = vmatmul.f32.vlgmr.msrb.gmra.mxu0 %v2749_v22 }
 0x5b4   : > { %v2783_v41 = vpop.f32.mrf.mxu0 }
 0x5b5   : > { %v2786_v17 = vmax.f32 %v2783_v41, 0.0 }
 0x5b7   : > { %3893 = vmatmul.msk.f32.vlgmr.msrb.gmra.mxu1 %vm2248_vm8, %v2786_v17 }
 0x634   : > { %v2811_v18 = vpop.f32.mrf.mxu1 }
 0x635   : > { %v3894_v19 = vmul.f32 -1.442695, %v2811_v18 }
 0x637   : > { %4216 = vpow2.f32 %v3894_v19 }
 0x63d   : > { %v4217_v20 = vpop.eup %4216 }
 0x63e   : > { %v2817_v24 = vadd.f32 1.0, %v4217_v20 }
 0x640   : > { %4218 = vrcp.f32 %v2817_v24  ;;  %v2829_v28 = vand.u32 2147483648, %v2817_v24  ;;  %v2827_v30 = vand.u32 2147483647, %v2817_v24  ;;  %vm2823_vm9 = vweird.f32 %v2817_v24 }
 0x642   : > { %v2830_v33 = vor.u32 1.1754944e-38, %v2829_v28  ;;  %vm2828_vm10 = vcmp.eq.f32.partialorder %v2827_v30, 8.507059e+37 }
 0x646   : > { %v4219_v44 = vpop.eup %4218 }
 0x647   : > { %v2819_v25 = vmul.f32 %v4219_v44, %v2817_v24  ;;  %vm2824_vm7 = vweird.f32 %v4219_v44 }
 0x648   : > { %vm2825_vm8 = vmor %vm2823_vm9, %vm2824_vm7 }
 0x649   : > { %v2820_v26 = vsub.f32 1.0, %v2819_v25 }
 0x64b   : > { %v2821_v29 = vmul.f32 %v4219_v44, %v2820_v26 }
 0x64d   : > { %v2822_v31 = vadd.f32 %v4219_v44, %v2821_v29 }
 0x64f   : > { %v2826_v34 = vsel %vm2825_vm8, %v4219_v44, %v2822_v31 }
 0x650   : > { %v2831_v35 = vsel %vm2828_vm10, %v2830_v33, %v2826_v34 }
 0x651   : > { %v2833_v36 = vperm.slane %v2831_v35, 0 }
 0x653   : > { %v2834_v37 = vmul.f32 %v2833_v36, %v2741_v10  ;;  %v2835_v38 = vmul.f32 %v2833_v36, %v2742_v11 }
 0x655   : > { %vm2836_vm11 = vcmp.ge.f32.partialorder %v2834_v37, 0.0  ;;  %vm2837_vm12 = vcmp.ge.f32.partialorder %v2835_v38, 0.0  ;;  %v2838_v39 = vmul.f32 0.2, %v2834_v37  ;;  %v2839_v23 = vmul.f32 0.2, %v2835_v38 }
 0x657   : > { %v2840_v40 = vsel %vm2836_vm11, %v2834_v37, %v2838_v39  ;;  %v2841_v46 = vsel %vm2837_vm12, %v2835_v38, %v2839_v23 }
 0x658   : > { %2842 = vst [vmem:[%s429_s14] sm:$0xff] %v2840_v40 }
 0x659   : > { %2843 = vst [vmem:[%s429_s14 + $0x8] sm:$0xff] %v2841_v46 }
 0x65a   : > { %4339 = shalt.err (!%p4336_p8)
}
 0x65b   : > { %s4392_s13 = smov 128   ;;  %s4393_s16 = smov 8  }
 0x65c   : > { %4130 = dma.vmem_to_hbm [thread:$0]  (%p4492_p5), %s2858_s15, 256, %s2860_s24, %s2845_s21, %s4392_s13, %s4392_s13, %s4393_s16  }
 0x65d PF: > { %p4152_p9 = scmp.ge.s32.totalorder %s4382_s20, 2  ;;  %s2874_s25 = sand.u32 1, %s4370_s17  }
 0x65e   : > { %s2875_s30 = scalar_lea.sflag [#allocation4], %s2874_s25 }
 0x65f   : > { %p4143_p10 = pnand %p4152_p9, %p4496_p6 }
 0x661   : > { %p4144_p11 = pneg %p4143_p10 }
 0x663   : > { %4365 = dma.done.wait (%p4144_p11), %s2875_s30, 256  }
 0x664   : > { %4367 = vsyncadd (%p4144_p11), %s2875_s30, 4294967040  ;;  %s4894_s20 = sld [smem:[#allocation13_spill]]  ;;  %s4897_s17 = smov %s4374_s18 }
 0x665   : > { %s4895_s12 = sld [smem:[#allocation12_spill]] }
 0x666   : > { %s4896_s19 = sld [smem:[#allocation14_spill]] }
 0x66a   : > { %p23_p12 = scmp.ge.s32.totalorder %s4894_s20, 4  }
 0x66b   : > { %s4898_s18 = smov %s4895_s12 }
 0x66c   :  { %25 = sbr.rel (!%p23_p12) target bundleno = 8 (0x8), region = 120 }
 0x671   :  { %2881 = vsyncpa [#allocation3], 1 }
 0x672   :  { %2883 = vsyncpa [#allocation3 + $0x1], 1 }
 0x673   :  { %2884 = vsyncpa [#allocation6], 1 }
 0x674   :  { %2885 = vsyncpa [#allocation4], 1 }
 0x675   :  { %2887 = vsyncpa [#allocation4 + $0x1], 1 }

</bundles_post_ra>
